<compile_context>
chip_gen: v7x
topology: tpu7x:2x2x1
jax: 0.10.0
libtpu: 0.0.40
codegen_flags: <defaults>
</compile_context>

<pallas_src>
import jax
import jax.numpy as jnp
from jax.experimental import pallas as pl
from jax.experimental.pallas import tpu as pltpu


# --------------------------------------------------------------------------
# kernel
# --------------------------------------------------------------------------
def _make_kernel(num_blockdiag_hidden):
    """Forward for one chunk of Ec ensemble members, one batch tile per step.

    Member e of the chunk occupies lane blocks [e*H, (e+1)*H) in the hidden
    activations and [e*od1p, (e+1)*od1p) in the outputs (lane-dense layout).
    """

    def kernel(*refs):
        # ref order:
        #   x,
        #   w0_packed, b0_packed,
        #   (w_bd, b) * num_blockdiag_hidden,
        #   w_out_fused, b_out_fused,
        #   r_all, min_tiled, max_tiled,
        #   mu_out, scale_out
        idx = 0
        x_ref = refs[idx]; idx += 1
        w0_ref = refs[idx]; idx += 1
        b0_ref = refs[idx]; idx += 1
        hidden = []
        for _ in range(num_blockdiag_hidden):
            hidden.append((refs[idx], refs[idx + 1]))
            idx += 2
        wout_ref = refs[idx]; idx += 1
        bout_ref = refs[idx]; idx += 1
        r_ref = refs[idx]; idx += 1
        min_ref = refs[idx]; idx += 1
        max_ref = refs[idx]; idx += 1
        mu_ref = refs[idx]; idx += 1
        scale_ref = refs[idx]; idx += 1

        x = x_ref[...]                                        # (TB, D_in) bf16

        # layer 0: shared input, all members' weights packed along lanes.
        z = jnp.dot(x, w0_ref[0],
                    preferred_element_type=jnp.float32) + b0_ref[0]
        h = z * jax.nn.sigmoid(z)                             # Swish, f32 (TB, EH)

        # deeper backbone layers: block-diagonal (EH, EH) bf16 weights.
        for (w_ref, b_ref) in hidden:
            z = jnp.dot(h.astype(jnp.bfloat16), w_ref[0],
                        preferred_element_type=jnp.float32) + b_ref[0]
            h = z * jax.nn.sigmoid(z)

        # fused output layer: mu || logstd in one lane-dense dot; the split
        # boundary EO is a multiple of 128 so slicing is vreg-aligned.
        out = jnp.dot(h.astype(jnp.bfloat16), wout_ref[0],
                      preferred_element_type=jnp.float32) + bout_ref[0]
        eo = out.shape[-1] // 2
        mu = out[:, :eo]
        logstd = out[:, eo:]

        # soft_clamp (f32) with pre-tiled (1, EO) bounds.
        max_l = max_ref[...]
        min_l = min_ref[...]
        logstd = max_l - jax.nn.softplus(max_l - logstd)
        logstd = min_l + jax.nn.softplus(logstd - min_l)

        # 'local' residual: x @ R scatters x[:, :obs_dim] into each member's
        # mu slot (reward column untouched) with no lane shuffles.
        mu = mu + jnp.dot(x, r_ref[...], preferred_element_type=jnp.float32)

        mu_ref[0] = mu                                        # (TB, EO) f32
        scale_ref[0] = jnp.exp(logstd)

    return kernel


# --------------------------------------------------------------------------
# host-side parameter packing helpers (layout plumbing, not compute)
# --------------------------------------------------------------------------
def _chunk_block_diag(w, nb):
    """(E, I, O) -> (nb, Ec*I, Ec*O) block-diagonal per chunk of Ec members.

    Built directly into a zeros buffer (no dense (nb,Ec,Ec,I,O) intermediate).
    """
    E, I, O = w.shape
    Ec = E // nb
    wc = w.reshape(nb, Ec, I, O)
    out = jnp.zeros((nb, Ec * I, Ec * O), w.dtype)
    for e in range(Ec):
        out = out.at[:, e * I:(e + 1) * I, e * O:(e + 1) * O].set(wc[:, e])
    return out


def _pad_cols(a, width):
    pad = width - a.shape[-1]
    if pad == 0:
        return a
    return jnp.pad(a, [(0, 0)] * (a.ndim - 1) + [(0, pad)])


def _round_up(n, m):
    return -(-n // m) * m


def module_list_transition_forward(x, params, obs_dim, *, num_blocks=1,
                                    batch_tile=256):
    """Pallas forward: returns (loc, scale) of shape (E, batch, obs_dim+1)."""
    layers = params["layers"]
    out_w, out_b = params["out_w"], params["out_b"]
    min_logstd, max_logstd = params["min_logstd"], params["max_logstd"]

    f32 = jnp.float32
    bf16 = jnp.bfloat16

    E = out_w.shape[0]
    B, D_in = x.shape
    H = layers[0][0].shape[2]
    out_dim = out_w.shape[2]
    assert out_dim % 2 == 0, "output layer width must be 2*(obs_dim+1)"
    od1 = out_dim // 2
    assert od1 == obs_dim + 1, "expects with_reward=True (out = 2*(obs_dim+1))"
    for (w, b) in layers:
        assert w.shape[0] == E and b.shape[0] == E

    # num_blocks=1 by default: v5e/v6e have a single TensorCore (a 2-step chunk
    # grid is just serial overhead) and on v7x the batch axis feeds both TCs.
    nb = num_blocks
    assert E % nb == 0
    Ec = E // nb
    EH = Ec * H

    # Pad the per-member output width so EO = Ec*od1p is a multiple of 128
    # (unmasked lane-dense stores, vreg-aligned mu/logstd split).  Fall back to
    # an 8-multiple if the 128-alignment would blow up the padding.
    od1p = od1
    while (Ec * od1p) % 128 != 0:
        od1p += 1
    if od1p > max(4 * _round_up(od1, 8), 32):
        od1p = _round_up(od1, 8)
    EO = Ec * od1p

    # ---- pack parameters into a few lane-dense bf16 slabs -------------------
    w0, b0 = layers[0]
    w0p = (w0.astype(bf16).reshape(nb, Ec, D_in, H)
           .transpose(0, 2, 1, 3).reshape(nb, D_in, EH))
    b0p = b0.astype(f32).reshape(nb, EH)[:, None, :]              # (nb, 1, EH)

    hidden_packed = []
    for (w, b) in layers[1:]:
        hidden_packed.append((_chunk_block_diag(w.astype(bf16), nb),
                              b.astype(f32).reshape(nb, EH)[:, None, :]))

    # output layer: split mu / logstd, pad od1 -> od1p, block-diagonalize, fuse.
    w_mu = _chunk_block_diag(_pad_cols(out_w[:, :, :od1].astype(bf16), od1p), nb)
    w_ls = _chunk_block_diag(_pad_cols(out_w[:, :, od1:].astype(bf16), od1p), nb)
    w_out = jnp.concatenate([w_mu, w_ls], axis=-1)                # (nb, EH, 2*EO)
    b_mu = _pad_cols(out_b[:, 0, :od1].astype(f32), od1p).reshape(nb, EO)
    b_ls = _pad_cols(out_b[:, 0, od1:].astype(f32), od1p).reshape(nb, EO)
    b_out = jnp.concatenate([b_mu, b_ls], axis=-1)[:, None, :]    # (nb, 1, 2*EO)

    # one-hot residual projection: block e = I_{obs_dim} padded to od1p cols.
    r_single = jnp.zeros((D_in, od1p), bf16).at[
        jnp.arange(obs_dim), jnp.arange(obs_dim)].set(1.0)
    r_all = jnp.tile(r_single, (1, Ec))                           # (D_in, EO)

    min_t = jnp.tile(_pad_cols(min_logstd.astype(f32).reshape(1, od1), od1p),
                     (1, Ec))                                     # (1, EO)
    max_t = jnp.tile(_pad_cols(max_logstd.astype(f32).reshape(1, od1), od1p),
                     (1, Ec))

    # ---- batch tiling --------------------------------------------------------
    TB = min(int(batch_tile), _round_up(B, 8))
    TB = max(8, _round_up(TB, 8))
    B_pad = _round_up(B, TB)
    n_bb = B_pad // TB
    x_p = jnp.zeros((B_pad, D_in), bf16).at[:B, :].set(x.astype(bf16))

    # ---- specs ---------------------------------------------------------------
    inputs = [x_p, w0p, b0p]
    in_specs = [
        pl.BlockSpec((TB, D_in), lambda c, b: (b, 0)),
        pl.BlockSpec((1, D_in, EH), lambda c, b: (c, 0, 0)),
        pl.BlockSpec((1, 1, EH), lambda c, b: (c, 0, 0)),
    ]
    for (wbd, bp) in hidden_packed:
        inputs += [wbd, bp]
        in_specs += [
            pl.BlockSpec((1, EH, EH), lambda c, b: (c, 0, 0)),
            pl.BlockSpec((1, 1, EH), lambda c, b: (c, 0, 0)),
        ]
    inputs += [w_out, b_out, r_all, min_t, max_t]
    in_specs += [
        pl.BlockSpec((1, EH, 2 * EO), lambda c, b: (c, 0, 0)),
        pl.BlockSpec((1, 1, 2 * EO), lambda c, b: (c, 0, 0)),
        pl.BlockSpec((D_in, EO), lambda c, b: (0, 0)),
        pl.BlockSpec((1, EO), lambda c, b: (0, 0)),
        pl.BlockSpec((1, EO), lambda c, b: (0, 0)),
    ]

    out_specs = [pl.BlockSpec((1, TB, EO), lambda c, b: (c, b, 0)),
                 pl.BlockSpec((1, TB, EO), lambda c, b: (c, b, 0))]
    out_shape = [jax.ShapeDtypeStruct((nb, B_pad, EO), f32),
                 jax.ShapeDtypeStruct((nb, B_pad, EO), f32)]

    # ---- explicit VMEM budget (per-step block bytes, default double-buffered)
    blk_bytes = TB * D_in * 2                                     # x (bf16)
    blk_bytes += D_in * EH * 2 + EH * 4                           # layer 0
    blk_bytes += len(hidden_packed) * (EH * EH * 2 + EH * 4)      # hidden layers
    blk_bytes += EH * 2 * EO * 2 + 2 * EO * 4                     # fused output
    blk_bytes += D_in * EO * 2 + 2 * EO * 4                       # r_all, min, max
    blk_bytes += 2 * TB * EO * 4                                  # mu, scale out
    vmem_limit = int(min(100 * 2 ** 20, max(16 * 2 ** 20, 3 * blk_bytes)))

    kernel = _make_kernel(len(layers) - 1)
    mu, scale = pl.pallas_call(
        kernel,
        grid=(nb, n_bb),
        in_specs=in_specs,
        out_specs=out_specs,
        out_shape=out_shape,
        compiler_params=pltpu.CompilerParams(
            dimension_semantics=("parallel", "parallel"),
            vmem_limit_bytes=vmem_limit),
    )(*inputs)

    # (nb, B_pad, Ec*od1p) -> (E, B, od1): drop batch/lane padding, relayout.
    def _unpack(y):
        y = y[:, :B, :].reshape(nb, B, Ec, od1p).transpose(0, 2, 1, 3)
        return y.reshape(E, B, od1p)[..., :od1]

    return _unpack(mu), _unpack(scale)


# ---------------- pure-JAX reference (mirrors the torch chunked forward) ----
def _ensemble_chunk_forward(x, layers, out_w, out_b, min_l, max_l, obs_dim):
    (w0, b0) = layers[0]
    h = jnp.einsum("bj,ejk->ebk", x, w0) + b0
    h = h * jax.nn.sigmoid(h)
    for (w, b) in layers[1:]:
        h = jnp.einsum("ebj,ejk->ebk", h, w) + b
        h = h * jax.nn.sigmoid(h)
    out = jnp.einsum("ebj,ejk->ebk", h, out_w) + out_b
    od1 = out.shape[-1] // 2
    mu, logstd = out[..., :od1], out[..., od1:]
    logstd = max_l - jax.nn.softplus(max_l - logstd)
    logstd = min_l + jax.nn.softplus(logstd - min_l)
    mu = jnp.concatenate(
        [mu[..., :obs_dim] + x[:, :obs_dim], mu[..., obs_dim:]], axis=-1)
    return mu, jnp.exp(logstd)


def reference_forward(x, params, chunk_size, obs_dim):
    E = params["out_w"].shape[0]
    chunk_num = E // chunk_size
    bounds = [(i * chunk_size, (i + 1) * chunk_size) for i in range(chunk_num)]
    bounds.append((chunk_num * chunk_size, E))   # residual chunk
    locs, scales = [], []
    for (s, e) in bounds:
        if s == e:
            continue
        layers = [(w[s:e], b[s:e]) for (w, b) in params["layers"]]
        loc, scale = _ensemble_chunk_forward(
            x, layers, params["out_w"][s:e], params["out_b"][s:e],
            params["min_logstd"], params["max_logstd"], obs_dim)
        locs.append(loc)
        scales.append(scale)
    return jnp.concatenate(locs, axis=0), jnp.concatenate(scales, axis=0)


if __name__ == "__main__":
    obs_dim, action_dim = 11, 3
    hidden_features = 32
    hidden_layers = 2
    ensemble_size = 16          # total models held by ModuleListTransition
    chunk_size = 14             # -> chunks of [14, 2]
    batch = 8

    D_in = obs_dim + action_dim
    od1 = obs_dim + 1           # with_reward=True
    out_dim = 2 * od1

    key = jax.random.PRNGKey(0)
    keys = jax.random.split(key, hidden_layers + 2)

    # Deterministic init mirroring EnsembleLinear.__init__:
    #   weight ~ trunc_normal(std = 1 / (2*sqrt(in_features))), bias = 0
    layers = []
    in_f = D_in
    for i in range(hidden_layers):
        std = 1.0 / (2.0 * in_f ** 0.5)
        w = jax.random.truncated_normal(
            keys[i], -2.0, 2.0, (ensemble_size, in_f, hidden_features),
            jnp.float32) * std
        b = jnp.zeros((ensemble_size, 1, hidden_features), jnp.float32)
        layers.append((w, b))
        in_f = hidden_features
    std = 1.0 / (2.0 * hidden_features ** 0.5)
    out_w = jax.random.truncated_normal(
        keys[hidden_layers], -2.0, 2.0,
        (ensemble_size, hidden_features, out_dim), jnp.float32) * std
    out_b = jnp.zeros((ensemble_size, 1, out_dim), jnp.float32)

    params = {
        "layers": layers,
        "out_w": out_w,
        "out_b": out_b,
        "max_logstd": jnp.full((od1,), 0.25, jnp.float32),
        "min_logstd": jnp.full((od1,), -5.0, jnp.float32),
    }

    obs_action = jax.random.normal(keys[hidden_layers + 1], (batch, D_in),
                                   jnp.float32)

    loc, scale = module_list_transition_forward(obs_action, params, obs_dim)
    loc = jax.block_until_ready(loc)
    scale = jax.block_until_ready(scale)

    loc_ref, scale_ref = reference_forward(obs_action, params, chunk_size,
                                           obs_dim)
    assert loc.shape == (ensemble_size, batch, od1)
    assert scale.shape == (ensemble_size, batch, od1)
    # bf16 weight slabs -> looser tolerance than the pure-f32 version.
    assert jnp.allclose(loc, loc_ref, atol=3e-2, rtol=3e-2)
    assert jnp.allclose(scale, scale_ref, atol=3e-2, rtol=3e-2)

    print("KERNEL_OK")
</pallas_src>

<mosaic_0001>
module attributes {stable_mosaic.version = 11 : i64} {
  func.func @kernel(%arg0: i32, %arg1: i32, %arg2: memref<8x14xbf16, #tpu.memory_space<vmem>>, %arg3: memref<1x14x512xbf16, #tpu.memory_space<vmem>>, %arg4: memref<1x1x512xf32, #tpu.memory_space<vmem>>, %arg5: memref<1x512x512xbf16, #tpu.memory_space<vmem>>, %arg6: memref<1x1x512xf32, #tpu.memory_space<vmem>>, %arg7: memref<1x512x512xbf16, #tpu.memory_space<vmem>>, %arg8: memref<1x1x512xf32, #tpu.memory_space<vmem>>, %arg9: memref<14x256xbf16, #tpu.memory_space<vmem>>, %arg10: memref<1x256xf32, #tpu.memory_space<vmem>>, %arg11: memref<1x256xf32, #tpu.memory_space<vmem>>, %arg12: memref<1x8x256xf32, #tpu.memory_space<vmem>>, %arg13: memref<1x8x256xf32, #tpu.memory_space<vmem>>) attributes {dimension_semantics = [#tpu.dimension_semantics<parallel>, #tpu.dimension_semantics<parallel>], iteration_bounds = array<i64: 1, 1>, scalar_prefetch = 0 : i64, scratch_operands = 0 : i64, tpu.core_type = #tpu.core_type<tc>, window_params = [{transform_indices = @transform_0, window_bounds = array<i64: 8, 14>}, {transform_indices = @transform_1, window_bounds = array<i64: 1, 14, 512>}, {transform_indices = @transform_2, window_bounds = array<i64: 1, 1, 512>}, {transform_indices = @transform_3, window_bounds = array<i64: 1, 512, 512>}, {transform_indices = @transform_4, window_bounds = array<i64: 1, 1, 512>}, {transform_indices = @transform_5, window_bounds = array<i64: 1, 512, 512>}, {transform_indices = @transform_6, window_bounds = array<i64: 1, 1, 512>}, {pipeline_mode = #tpu.pipeline_mode<synchronous>, transform_indices = @transform_7, window_bounds = array<i64: 14, 256>}, {pipeline_mode = #tpu.pipeline_mode<synchronous>, transform_indices = @transform_8, window_bounds = array<i64: 1, 256>}, {pipeline_mode = #tpu.pipeline_mode<synchronous>, transform_indices = @transform_9, window_bounds = array<i64: 1, 256>}, {transform_indices = @transform_10, window_bounds = array<i64: 1, 8, 256>}, {transform_indices = @transform_11, window_bounds = array<i64: 1, 8, 256>}]} {
    %c0 = arith.constant 0 : index
    %c0_0 = arith.constant 0 : index
    %0 = vector.load %arg2[%c0, %c0_0] : memref<8x14xbf16, #tpu.memory_space<vmem>>, vector<8x14xbf16>
    %c0_1 = arith.constant 0 : index
    %c0_2 = arith.constant 0 : index
    %c0_3 = arith.constant 0 : index
    %1 = vector.load %arg3[%c0_1, %c0_2, %c0_3] : memref<1x14x512xbf16, #tpu.memory_space<vmem>>, vector<1x14x512xbf16>
    %2 = vector.shape_cast %1 : vector<1x14x512xbf16> to vector<14x512xbf16>
    %cst = arith.constant dense<0.000000e+00> : vector<8x512xf32>
    %3 = tpu.matmul %0, %2, %cst {dimension_numbers = #tpu.dot_dimension_numbers<[1], [0], [0], [1], [0, 0, 1, 1], [], []>} : vector<8x14xbf16>, vector<14x512xbf16>, vector<8x512xf32> -> vector<8x512xf32>
    %c0_4 = arith.constant 0 : index
    %c0_5 = arith.constant 0 : index
    %c0_6 = arith.constant 0 : index
    %4 = vector.load %arg4[%c0_4, %c0_5, %c0_6] : memref<1x1x512xf32, #tpu.memory_space<vmem>>, vector<1x1x512xf32>
    %5 = vector.shape_cast %4 : vector<1x1x512xf32> to vector<1x512xf32>
    %6 = vector.broadcast %5 : vector<1x512xf32> to vector<8x512xf32>
    %7 = arith.addf %3, %6 : vector<8x512xf32>
    %8 = arith.negf %7 : vector<8x512xf32>
    %9 = math.exp %8 : vector<8x512xf32>
    %cst_7 = arith.constant 1.000000e+00 : f32
    %10 = vector.broadcast %cst_7 : f32 to vector<8x512xf32>
    %11 = arith.addf %10, %9 : vector<8x512xf32>
    %12 = arith.divf %10, %11 : vector<8x512xf32>
    %13 = arith.mulf %7, %12 : vector<8x512xf32>
    %14 = arith.truncf %13 : vector<8x512xf32> to vector<8x512xbf16>
    %c0_8 = arith.constant 0 : index
    %c0_9 = arith.constant 0 : index
    %c0_10 = arith.constant 0 : index
    %15 = vector.load %arg5[%c0_8, %c0_9, %c0_10] : memref<1x512x512xbf16, #tpu.memory_space<vmem>>, vector<1x512x512xbf16>
    %16 = vector.shape_cast %15 : vector<1x512x512xbf16> to vector<512x512xbf16>
    %cst_11 = arith.constant dense<0.000000e+00> : vector<8x512xf32>
    %17 = tpu.matmul %14, %16, %cst_11 {dimension_numbers = #tpu.dot_dimension_numbers<[1], [0], [0], [1], [0, 0, 1, 1], [], []>} : vector<8x512xbf16>, vector<512x512xbf16>, vector<8x512xf32> -> vector<8x512xf32>
    %c0_12 = arith.constant 0 : index
    %c0_13 = arith.constant 0 : index
    %c0_14 = arith.constant 0 : index
    %18 = vector.load %arg6[%c0_12, %c0_13, %c0_14] : memref<1x1x512xf32, #tpu.memory_space<vmem>>, vector<1x1x512xf32>
    %19 = vector.shape_cast %18 : vector<1x1x512xf32> to vector<1x512xf32>
    %20 = vector.broadcast %19 : vector<1x512xf32> to vector<8x512xf32>
    %21 = arith.addf %17, %20 : vector<8x512xf32>
    %22 = arith.negf %21 : vector<8x512xf32>
    %23 = math.exp %22 : vector<8x512xf32>
    %cst_15 = arith.constant 1.000000e+00 : f32
    %24 = vector.broadcast %cst_15 : f32 to vector<8x512xf32>
    %25 = arith.addf %24, %23 : vector<8x512xf32>
    %26 = arith.divf %24, %25 : vector<8x512xf32>
    %27 = arith.mulf %21, %26 : vector<8x512xf32>
    %28 = arith.truncf %27 : vector<8x512xf32> to vector<8x512xbf16>
    %c0_16 = arith.constant 0 : index
    %c0_17 = arith.constant 0 : index
    %c0_18 = arith.constant 0 : index
    %29 = vector.load %arg7[%c0_16, %c0_17, %c0_18] : memref<1x512x512xbf16, #tpu.memory_space<vmem>>, vector<1x512x512xbf16>
    %30 = vector.shape_cast %29 : vector<1x512x512xbf16> to vector<512x512xbf16>
    %cst_19 = arith.constant dense<0.000000e+00> : vector<8x512xf32>
    %31 = tpu.matmul %28, %30, %cst_19 {dimension_numbers = #tpu.dot_dimension_numbers<[1], [0], [0], [1], [0, 0, 1, 1], [], []>} : vector<8x512xbf16>, vector<512x512xbf16>, vector<8x512xf32> -> vector<8x512xf32>
    %c0_20 = arith.constant 0 : index
    %c0_21 = arith.constant 0 : index
    %c0_22 = arith.constant 0 : index
    %32 = vector.load %arg8[%c0_20, %c0_21, %c0_22] : memref<1x1x512xf32, #tpu.memory_space<vmem>>, vector<1x1x512xf32>
    %33 = vector.shape_cast %32 : vector<1x1x512xf32> to vector<1x512xf32>
    %34 = vector.broadcast %33 : vector<1x512xf32> to vector<8x512xf32>
    %35 = arith.addf %31, %34 : vector<8x512xf32>
    %36 = vector.extract_strided_slice %35 {offsets = [0, 0], sizes = [8, 256], strides = [1, 1]} : vector<8x512xf32> to vector<8x256xf32>
    %37 = vector.extract_strided_slice %35 {offsets = [0, 256], sizes = [8, 256], strides = [1, 1]} : vector<8x512xf32> to vector<8x256xf32>
    %c0_23 = arith.constant 0 : index
    %c0_24 = arith.constant 0 : index
    %38 = vector.load %arg11[%c0_23, %c0_24] : memref<1x256xf32, #tpu.memory_space<vmem>>, vector<1x256xf32>
    %c0_25 = arith.constant 0 : index
    %c0_26 = arith.constant 0 : index
    %39 = vector.load %arg10[%c0_25, %c0_26] : memref<1x256xf32, #tpu.memory_space<vmem>>, vector<1x256xf32>
    %40 = vector.broadcast %38 : vector<1x256xf32> to vector<8x256xf32>
    %41 = arith.subf %40, %37 : vector<8x256xf32>
    %cst_27 = arith.constant 0.000000e+00 : f32
    %42 = vector.broadcast %cst_27 : f32 to vector<8x256xf32>
    %43 = arith.maximumf %41, %42 : vector<8x256xf32>
    %44 = vector.broadcast %cst_27 : f32 to vector<8x256xf32>
    %45 = arith.subf %41, %44 : vector<8x256xf32>
    %46 = arith.cmpf one, %45, %45 : vector<8x256xf32>
    %47 = vector.broadcast %cst_27 : f32 to vector<8x256xf32>
    %48 = arith.addf %41, %47 : vector<8x256xf32>
    %49 = math.absf %45 : vector<8x256xf32>
    %cst_28 = arith.constant 0.000000e+00 : f32
    %50 = vector.broadcast %cst_28 : f32 to vector<8x256xf32>
    %51 = arith.subf %50, %49 : vector<8x256xf32>
    %52 = math.exp %51 : vector<8x256xf32>
    %53 = math.log1p %52 : vector<8x256xf32>
    %54 = arith.addf %43, %53 : vector<8x256xf32>
    %55 = arith.select %46, %48, %54 : vector<8x256xi1>, vector<8x256xf32>
    %56 = vector.broadcast %38 : vector<1x256xf32> to vector<8x256xf32>
    %57 = arith.subf %56, %55 : vector<8x256xf32>
    %58 = vector.broadcast %39 : vector<1x256xf32> to vector<8x256xf32>
    %59 = arith.subf %57, %58 : vector<8x256xf32>
    %cst_29 = arith.constant 0.000000e+00 : f32
    %60 = vector.broadcast %cst_29 : f32 to vector<8x256xf32>
    %61 = arith.maximumf %59, %60 : vector<8x256xf32>
    %62 = vector.broadcast %cst_29 : f32 to vector<8x256xf32>
    %63 = arith.subf %59, %62 : vector<8x256xf32>
    %64 = arith.cmpf one, %63, %63 : vector<8x256xf32>
    %65 = vector.broadcast %cst_29 : f32 to vector<8x256xf32>
    %66 = arith.addf %59, %65 : vector<8x256xf32>
    %67 = math.absf %63 : vector<8x256xf32>
    %cst_30 = arith.constant 0.000000e+00 : f32
    %68 = vector.broadcast %cst_30 : f32 to vector<8x256xf32>
    %69 = arith.subf %68, %67 : vector<8x256xf32>
    %70 = math.exp %69 : vector<8x256xf32>
    %71 = math.log1p %70 : vector<8x256xf32>
    %72 = arith.addf %61, %71 : vector<8x256xf32>
    %73 = arith.select %64, %66, %72 : vector<8x256xi1>, vector<8x256xf32>
    %74 = vector.broadcast %39 : vector<1x256xf32> to vector<8x256xf32>
    %75 = arith.addf %74, %73 : vector<8x256xf32>
    %c0_31 = arith.constant 0 : index
    %c0_32 = arith.constant 0 : index
    %76 = vector.load %arg9[%c0_31, %c0_32] : memref<14x256xbf16, #tpu.memory_space<vmem>>, vector<14x256xbf16>
    %cst_33 = arith.constant dense<0.000000e+00> : vector<8x256xf32>
    %77 = tpu.matmul %0, %76, %cst_33 {dimension_numbers = #tpu.dot_dimension_numbers<[1], [0], [0], [1], [0, 0, 1, 1], [], []>} : vector<8x14xbf16>, vector<14x256xbf16>, vector<8x256xf32> -> vector<8x256xf32>
    %78 = arith.addf %36, %77 : vector<8x256xf32>
    %c0_34 = arith.constant 0 : index
    %c0_35 = arith.constant 0 : index
    %c0_36 = arith.constant 0 : index
    %79 = vector.load %arg12[%c0_34, %c0_35, %c0_36] : memref<1x8x256xf32, #tpu.memory_space<vmem>>, vector<1x8x256xf32>
    %80 = vector.shape_cast %79 : vector<1x8x256xf32> to vector<8x256xf32>
    %81 = vector.shape_cast %78 : vector<8x256xf32> to vector<1x8x256xf32>
    tpu.vector_store %arg12[%c0_34, %c0_35, %c0_36], %81 {strides = array<i32>} : memref<1x8x256xf32, #tpu.memory_space<vmem>>, vector<1x8x256xf32>,
    %82 = math.exp %75 : vector<8x256xf32>
    %c0_37 = arith.constant 0 : index
    %c0_38 = arith.constant 0 : index
    %c0_39 = arith.constant 0 : index
    %83 = vector.load %arg13[%c0_37, %c0_38, %c0_39] : memref<1x8x256xf32, #tpu.memory_space<vmem>>, vector<1x8x256xf32>
    %84 = vector.shape_cast %83 : vector<1x8x256xf32> to vector<8x256xf32>
    %85 = vector.shape_cast %82 : vector<8x256xf32> to vector<1x8x256xf32>
    tpu.vector_store %arg13[%c0_37, %c0_38, %c0_39], %85 {strides = array<i32>} : memref<1x8x256xf32, #tpu.memory_space<vmem>>, vector<1x8x256xf32>,
    return
  }
  func.func @transform_0(%arg0: i32, %arg1: i32) -> (i32, i32) {
    %c0_i32 = arith.constant 0 : i32
    %c0_i32_0 = arith.constant 0 : i32
    return %arg1, %c0_i32 : i32, i32
  }
  func.func @transform_1(%arg0: i32, %arg1: i32) -> (i32, i32, i32) {
    %c0_i32 = arith.constant 0 : i32
    %c0_i32_0 = arith.constant 0 : i32
    %c0_i32_1 = arith.constant 0 : i32
    return %arg0, %c0_i32, %c0_i32_0 : i32, i32, i32
  }
  func.func @transform_2(%arg0: i32, %arg1: i32) -> (i32, i32, i32) {
    %c0_i32 = arith.constant 0 : i32
    %c0_i32_0 = arith.constant 0 : i32
    %c0_i32_1 = arith.constant 0 : i32
    return %arg0, %c0_i32, %c0_i32_0 : i32, i32, i32
  }
  func.func @transform_3(%arg0: i32, %arg1: i32) -> (i32, i32, i32) {
    %c0_i32 = arith.constant 0 : i32
    %c0_i32_0 = arith.constant 0 : i32
    %c0_i32_1 = arith.constant 0 : i32
    return %arg0, %c0_i32, %c0_i32_0 : i32, i32, i32
  }
  func.func @transform_4(%arg0: i32, %arg1: i32) -> (i32, i32, i32) {
    %c0_i32 = arith.constant 0 : i32
    %c0_i32_0 = arith.constant 0 : i32
    %c0_i32_1 = arith.constant 0 : i32
    return %arg0, %c0_i32, %c0_i32_0 : i32, i32, i32
  }
  func.func @transform_5(%arg0: i32, %arg1: i32) -> (i32, i32, i32) {
    %c0_i32 = arith.constant 0 : i32
    %c0_i32_0 = arith.constant 0 : i32
    %c0_i32_1 = arith.constant 0 : i32
    return %arg0, %c0_i32, %c0_i32_0 : i32, i32, i32
  }
  func.func @transform_6(%arg0: i32, %arg1: i32) -> (i32, i32, i32) {
    %c0_i32 = arith.constant 0 : i32
    %c0_i32_0 = arith.constant 0 : i32
    %c0_i32_1 = arith.constant 0 : i32
    return %arg0, %c0_i32, %c0_i32_0 : i32, i32, i32
  }
  func.func @transform_7(%arg0: i32, %arg1: i32) -> (i32, i32) {
    %c0_i32 = arith.constant 0 : i32
    %c0_i32_0 = arith.constant 0 : i32
    %c0_i32_1 = arith.constant 0 : i32
    return %c0_i32, %c0_i32_0 : i32, i32
  }
  func.func @transform_8(%arg0: i32, %arg1: i32) -> (i32, i32) {
    %c0_i32 = arith.constant 0 : i32
    %c0_i32_0 = arith.constant 0 : i32
    %c0_i32_1 = arith.constant 0 : i32
    return %c0_i32, %c0_i32_0 : i32, i32
  }
  func.func @transform_9(%arg0: i32, %arg1: i32) -> (i32, i32) {
    %c0_i32 = arith.constant 0 : i32
    %c0_i32_0 = arith.constant 0 : i32
    %c0_i32_1 = arith.constant 0 : i32
    return %c0_i32, %c0_i32_0 : i32, i32
  }
  func.func @transform_10(%arg0: i32, %arg1: i32) -> (i32, i32, i32) {
    %c0_i32 = arith.constant 0 : i32
    %c0_i32_0 = arith.constant 0 : i32
    return %arg0, %arg1, %c0_i32 : i32, i32, i32
  }
  func.func @transform_11(%arg0: i32, %arg1: i32) -> (i32, i32, i32) {
    %c0_i32 = arith.constant 0 : i32
    %c0_i32_0 = arith.constant 0 : i32
    return %arg0, %arg1, %c0_i32 : i32, i32, i32
  }
}

</mosaic_0001>

<bundles_post_ra>
// kernel: tpu_custom_call.1
= control target key start
LH: loop header
LB: loop body
LE: loop exit
PB: predicated region body
PF: predicated region fallthrough
CT: control target
= control target key end

     0   :  { %17 = vsyncpa [#allocation3], 0  ;;  %s3615_s0 = inlined_call_operand.hbm [shape: bf16[8,14], index: 0, kind: input, shape index: {}]   ;;  %s3616_s1 = inlined_call_operand.hbm [shape: bf16[1,14,512], index: 1, kind: input, shape index: {}]   ;;  %s3617_s2 = inlined_call_operand.vmem [shape: f32[1,1,512], index: 2, kind: input, shape index: {}]   ;;  %s3618_s3 = inlined_call_operand.hbm [shape: bf16[1,512,512], index: 3, kind: input, shape index: {}]   ;;  %s3619_s4 = inlined_call_operand.vmem [shape: f32[1,1,512], index: 4, kind: input, shape index: {}]   ;;  %s3620_s5 = inlined_call_operand.hbm [shape: bf16[1,512,512], index: 5, kind: input, shape index: {}]   ;;  %s3621_s6 = inlined_call_operand.hbm [shape: f32[1,1,512], index: 6, kind: input, shape index: {}]   ;;  %s3622_s7 = inlined_call_operand.vmem [shape: bf16[14,256], index: 7, kind: input, shape index: {}]   ;;  %s3623_s8 = inlined_call_operand.vmem [shape: f32[1,256], index: 8, kind: input, shape index: {}]   ;;  %s3624_s9 = inlined_call_operand.vmem [shape: f32[1,256], index: 9, kind: input, shape index: {}]   ;;  %s3625_s10 = inlined_call_operand.hbm [shape: f32[1,8,256], index: 10, kind: output, shape index: {0}]   ;;  %s3626_s11 = inlined_call_operand.hbm [shape: f32[1,8,256], index: 11, kind: output, shape index: {1}]  }
   0x1   :  { %18 = vsyncpa [#allocation6], 0 }
   0x2   :  { %19 = vsyncpa [#allocation9], 0 }
   0x3   :  { %20 = vsyncpa [#allocation4], 0 }
   0x4   :  { %21 = vsyncpa [#allocation13], 0  ;;  %s3344_s17 = smov [#allocation5]   ;;  %s3180_s21 = scalar_lea.hbm %s3616_s1, 512 }
   0x5   :  { %s37_s18 = sshll.u32 %s3344_s17, 4  ;;  %p3181_p0 = scmp.ne.s32.totalorder %s3616_s1, %s3180_s21  ;;  %s38_s18 = int_to_ptr.vmem [resolvable:$true] %s37_s18 }
   0x6   :  { %p3184_p1 = scmp.lt.u32.totalorder %s3180_s21, %s3616_s1 }
   0x8   :  { %p3186_p2 = pnand %p3184_p1, %p3181_p0 }
   0xa   :  { %3189 = shalt.err (!%p3186_p2)
}
   0xb   :  { %s3190_s26 = scalar_lea.vmem %s38_s18, 512  ;;  %p3195_p4 = scmp.lt.s32.totalorder %s38_s18, %s38_s18 }
   0xc   :  { %p3191_p3 = scmp.ne.s32.totalorder %s38_s18, %s3190_s26  ;;  %p3196_p5 = scmp.lt.s32.totalorder %s3190_s26, %s3190_s26 }
   0xe   :  { %p3197_p6 = por %p3196_p5, %p3195_p4 }
  0x10   :  { %p3198_p7 = pnand %p3197_p6, %p3191_p3 }
  0x12   :  { %3201 = shalt.err (!%p3198_p7)
}
  0x13   :  { %s3345_s27 = smov 256   ;;  %s3346_s28 = smov 16  }
  0x14   :  { %43 = dma.hbm_to_vmem [thread:$0]  %s3616_s1, 512, %s38_s18, [#allocation6], %s3345_s27, %s3345_s27, %s3346_s28  }
  0x15   :  { %s3347_s12 = smov [#allocation8]   ;;  %s3348_s14 = smov [#allocation2]  }
  0x16   :  { %s65_s13 = sshll.u32 %s3347_s12, 4  ;;  %s28_s15 = sshll.u32 %s3348_s14, 4  ;;  %s66_s13 = int_to_ptr.vmem [resolvable:$true] %s65_s13  ;;  %s29_s15 = int_to_ptr.vmem [resolvable:$true] %s28_s15 }
  0x17   :  { %s3202_s19 = scalar_lea.hbm %s3620_s5, 16384 }
  0x18   :  { %p3203_p8 = scmp.ne.s32.totalorder %s3620_s5, %s3202_s19  ;;  %p3206_p9 = scmp.lt.u32.totalorder %s3202_s19, %s3620_s5 }
  0x1a   :  { %p3208_p10 = pnand %p3206_p9, %p3203_p8 }
  0x1c   :  { %3211 = shalt.err (!%p3208_p10)
}
  0x1d   :  { %s3212_s1 = scalar_lea.vmem %s66_s13, 16384  ;;  %p3217_p12 = scmp.lt.s32.totalorder %s66_s13, %s66_s13 }
  0x1e   :  { %p3213_p11 = scmp.ne.s32.totalorder %s66_s13, %s3212_s1  ;;  %p3218_p13 = scmp.lt.s32.totalorder %s3212_s1, %s3212_s1 }
  0x20   :  { %p3219_p0 = por %p3218_p13, %p3217_p12 }
  0x22   :  { %p3220_p1 = pnand %p3219_p0, %p3213_p11 }
  0x24   :  { %3223 = shalt.err (!%p3220_p1)
}
  0x25   :  { %71 = dma.hbm_to_vmem [thread:$0]  %s3620_s5, 16384, %s66_s13, [#allocation9], %s3345_s27, %s3345_s27, %s3346_s28  }
  0x26   :  { %s3224_s29 = scalar_lea.hbm %s3615_s0, 64 }
  0x27   :  { %p3225_p2 = scmp.ne.s32.totalorder %s3615_s0, %s3224_s29  ;;  %p3228_p3 = scmp.lt.u32.totalorder %s3224_s29, %s3615_s0 }
  0x29   :  { %p3230_p4 = pnand %p3228_p3, %p3225_p2 }
  0x2b   :  { %3233 = shalt.err (!%p3230_p4)
}
  0x2c   :  { %s3234_s17 = scalar_lea.vmem %s29_s15, 64  ;;  %p3239_p6 = scmp.lt.s32.totalorder %s29_s15, %s29_s15 }
  0x2d   :  { %p3235_p5 = scmp.ne.s32.totalorder %s29_s15, %s3234_s17  ;;  %p3240_p7 = scmp.lt.s32.totalorder %s3234_s17, %s3234_s17 }
  0x2f   :  { %p3241_p8 = por %p3240_p7, %p3239_p6 }
  0x31   :  { %p3242_p9 = pnand %p3241_p8, %p3235_p5 }
  0x33   :  { %3245 = shalt.err (!%p3242_p9)
}
  0x34   :  { %31 = dma.hbm_to_vmem [thread:$0]  %s3615_s0, 64, %s29_s15, [#allocation3]  }
  0x35   :  { %s3349_s19 = smov [#allocation7]   ;;  %s3350_s21 = smov [#allocation10]  }
  0x36   :  { %s51_s20 = sshll.u32 %s3349_s19, 4  ;;  %s78_s22 = sshll.u32 %s3350_s21, 4  ;;  %s52_s20 = int_to_ptr.vmem [resolvable:$true] %s51_s20  ;;  %s79_s22 = int_to_ptr.vmem [resolvable:$true] %s78_s22 }
  0x37   :  { %s3246_s18 = scalar_lea.hbm %s3618_s3, 16384 }
  0x38   :  { %p3247_p10 = scmp.ne.s32.totalorder %s3618_s3, %s3246_s18  ;;  %p3250_p11 = scmp.lt.u32.totalorder %s3246_s18, %s3618_s3 }
  0x3a   :  { %p3252_p12 = pnand %p3250_p11, %p3247_p10 }
  0x3c   :  { %3255 = shalt.err (!%p3252_p12)
}
  0x3d   :  { %s3256_s0 = scalar_lea.vmem %s52_s20, 16384  ;;  %p3261_p0 = scmp.lt.s32.totalorder %s52_s20, %s52_s20 }
  0x3e   :  { %p3257_p13 = scmp.ne.s32.totalorder %s52_s20, %s3256_s0  ;;  %p3262_p1 = scmp.lt.s32.totalorder %s3256_s0, %s3256_s0 }
  0x40   :  { %p3263_p2 = por %p3262_p1, %p3261_p0 }
  0x42   :  { %p3264_p3 = pnand %p3263_p2, %p3257_p13 }
  0x44   :  { %3267 = shalt.err (!%p3264_p3)
}
  0x45   :  { %57 = dma.hbm_to_vmem [thread:$0]  %s3618_s3, 16384, %s52_s20, [#allocation6], %s3345_s27, %s3345_s27, %s3346_s28  }
  0x46   :  { %s3268_s16 = scalar_lea.hbm %s3621_s6, 64 }
  0x47   :  { %p3269_p4 = scmp.ne.s32.totalorder %s3621_s6, %s3268_s16  ;;  %p3272_p5 = scmp.lt.u32.totalorder %s3268_s16, %s3621_s6 }
  0x49   :  { %p3274_p6 = pnand %p3272_p5, %p3269_p4 }
  0x4b   :  { %3277 = shalt.err (!%p3274_p6)
}
  0x4c   :  { %s3278_s21 = scalar_lea.vmem %s79_s22, 64  ;;  %p3283_p8 = scmp.lt.s32.totalorder %s79_s22, %s79_s22 }
  0x4d   :  { %p3279_p7 = scmp.ne.s32.totalorder %s79_s22, %s3278_s21  ;;  %p3284_p9 = scmp.lt.s32.totalorder %s3278_s21, %s3278_s21 }
  0x4f   :  { %p3285_p10 = por %p3284_p9, %p3283_p8 }
  0x51   :  { %p3286_p11 = pnand %p3285_p10, %p3279_p7 }
  0x53   :  { %3289 = shalt.err (!%p3286_p11)
}
  0x54   :  { %81 = dma.hbm_to_vmem [thread:$0]  %s3621_s6, 64, %s79_s22, [#allocation9]  }
  0x55   :  { %3334 = dma.done.wait [#allocation3], 64  }
  0x56   :  { %3335 = vsyncadd [#allocation3], 4294967232 }
  0x57   :  { %3336 = dma.done.wait [#allocation6], 16896  }
  0x58   :  { %3337 = vsyncadd [#allocation6], 4294950400 }
  0x59   :  { %3338 = dma.done.wait [#allocation9], 16448  }
  0x5a   :  { %3339 = vsyncadd [#allocation9], 4294950848  ;;  %v3351_v0 = vmov 0   ;;  %vm151_vm0 = vcmask 1046528   ;;  %v104_v3 = vld [vmem:[#allocation2] sm:$0xf] }
  0x5b   :  { %196 = vmatprep.mubr.bf16.mxu0 %v3351_v0  ;;  %237 = vmatprep.mubr.bf16.mxu1 %v3351_v0  ;;  %v2734_v1 = vld [vmem:[#allocation5 + $0x4] ss:$16 sps:$4 sm:$0x7f]   ;;  %v2736_v2 = vld [vmem:[#allocation5] ss:$16 sps:$4 sm:$0x7f]  }
  0x5c   :  { %2424 = vmatprep.subr.msk.bf16.mxu0 %vm151_vm0, %v2734_v1  ;;  %v2737_v4 = vld [vmem:[#allocation5 + $0xc] ss:$16 sps:$4 sm:$0x7f]   ;;  %v153_v5 = vsel %vm151_vm0, %v2736_v2, 0  ;;  %vm147_vm1 = vcmask 113664  }
  0x5d   :  { %v2739_v6 = vld [vmem:[#allocation5 + $0x8] ss:$16 sps:$4 sm:$0x7f]   ;;  %165 = vmatpush1.bf16.msra.mxu0 %v153_v5  ;;  %2426 = vmatprep.subr.msk.bf16.mxu1 %vm151_vm0, %v2737_v4  ;;  %v2740_v7 = vld [vmem:[#allocation7] ss:$16 sps:$4 sm:$0xff]  }
  0x5e   :  { %v2742_v8 = vld [vmem:[#allocation7 + $0x4] ss:$16 sps:$4 sm:$0xff]   ;;  %v159_v9 = vsel %vm151_vm0, %v2739_v6, 0  ;;  %v2745_v10 = vld [vmem:[#allocation7 + $0xc] ss:$16 sps:$4 sm:$0xff]  }
  0x5f   :  { %206 = vmatpush1.bf16.msra.mxu1 %v159_v9  ;;  %1068 = vmatprep.subr.bf16.mxu0 %v2742_v8  ;;  %v2743_v11 = vld [vmem:[#allocation7 + $0x8] ss:$16 sps:$4 sm:$0xff]   ;;  %v2748_v12 = vld [vmem:[#allocation7 + $0x24] ss:$16 sps:$4 sm:$0xff]   ;;  %v2746_v13 = vld [vmem:[#allocation7 + $0x20] ss:$16 sps:$4 sm:$0xff]  }
  0x60   :  { %2425 = vmatmul.mubr.msk.bf16.vlgmr.msra.gmra.mrb[0].mxu0 %vm147_vm1, %v104_v3  ;;  %1150 = vmatprep.subr.bf16.mxu1 %v2745_v10  ;;  %v2751_v14 = vld [vmem:[#allocation7 + $0x2c] ss:$16 sps:$4 sm:$0xff]   ;;  %v2754_v15 = vld [vmem:[#allocation7 + $0x44] ss:$16 sps:$4 sm:$0xff]   ;;  %v2749_v16 = vld [vmem:[#allocation7 + $0x28] ss:$16 sps:$4 sm:$0xff]  }
  0x61   :  { %1069 = vmatpush1.bf16.msra.mxu0 %v2740_v7  ;;  %v2757_v17 = vld [vmem:[#allocation7 + $0x4c] ss:$16 sps:$4 sm:$0xff]   ;;  %v2752_v18 = vld [vmem:[#allocation7 + $0x40] ss:$16 sps:$4 sm:$0xff]   ;;  %v2760_v19 = vld [vmem:[#allocation7 + $0x64] ss:$16 sps:$4 sm:$0xff]  }
  0x62   :  { %2427 = vmatmul.mubr.msk.bf16.vlgmr.msra.gmra.mrb[0].mxu1 %vm147_vm1, %v104_v3  ;;  %1070 = vmatprep.subr.bf16.mxu0 %v2748_v12  ;;  %v2755_v20 = vld [vmem:[#allocation7 + $0x48] ss:$16 sps:$4 sm:$0xff]   ;;  %v2763_v21 = vld [vmem:[#allocation7 + $0x6c] ss:$16 sps:$4 sm:$0xff]   ;;  %v2758_v22 = vld [vmem:[#allocation7 + $0x60] ss:$16 sps:$4 sm:$0xff]  }
  0x63   :  { %1151 = vmatpush1.bf16.msra.mxu1 %v2743_v11  ;;  %v2766_v23 = vld [vmem:[#allocation7 + $0x84] ss:$16 sps:$4 sm:$0xff]   ;;  %v2761_v24 = vld [vmem:[#allocation7 + $0x68] ss:$16 sps:$4 sm:$0xff]   ;;  %v2769_v25 = vld [vmem:[#allocation7 + $0x8c] ss:$16 sps:$4 sm:$0xff]   ;;  %v111_v11 = vlaneseq }
  0x64   :  { %1152 = vmatprep.subr.bf16.mxu1 %v2751_v14  ;;  %v2764_v26 = vld [vmem:[#allocation7 + $0x80] ss:$16 sps:$4 sm:$0xff]   ;;  %v2772_v27 = vld [vmem:[#allocation7 + $0xa4] ss:$16 sps:$4 sm:$0xff]   ;;  %v2767_v28 = vld [vmem:[#allocation7 + $0x88] ss:$16 sps:$4 sm:$0xff]  }
  0x65   :  { %1071 = vmatpush1.bf16.msra.mxu0 %v2746_v13  ;;  %v2770_v29 = vld [vmem:[#allocation7 + $0xa0] ss:$16 sps:$4 sm:$0xff]   ;;  %v2775_v30 = vld [vmem:[#allocation7 + $0xac] ss:$16 sps:$4 sm:$0xff]   ;;  %v2773_v31 = vld [vmem:[#allocation7 + $0xa8] ss:$16 sps:$4 sm:$0xff]  }
  0x66   :  { %1072 = vmatprep.subr.bf16.mxu0 %v2754_v15  ;;  %v2778_v32 = vld [vmem:[#allocation7 + $0xc4] ss:$16 sps:$4 sm:$0xff]   ;;  %v2781_v33 = vld [vmem:[#allocation7 + $0xcc] ss:$16 sps:$4 sm:$0xff]   ;;  %v2776_v34 = vld [vmem:[#allocation7 + $0xc0] ss:$16 sps:$4 sm:$0xff]  }
  0x67   :  { %1153 = vmatpush1.bf16.msra.mxu1 %v2749_v16  ;;  %v2784_v35 = vld [vmem:[#allocation7 + $0xe4] ss:$16 sps:$4 sm:$0xff]   ;;  %v2779_v36 = vld [vmem:[#allocation7 + $0xc8] ss:$16 sps:$4 sm:$0xff]   ;;  %v2787_v37 = vld [vmem:[#allocation7 + $0xec] ss:$16 sps:$4 sm:$0xff]  }
  0x68   :  { %1154 = vmatprep.subr.bf16.mxu1 %v2757_v17  ;;  %v2782_v38 = vld [vmem:[#allocation7 + $0xe0] ss:$16 sps:$4 sm:$0xff]   ;;  %v2785_v39 = vld [vmem:[#allocation7 + $0xe8] ss:$16 sps:$4 sm:$0xff]   ;;  %v2790_v40 = vld [vmem:[#allocation7 + $0x104] ss:$16 sps:$4 sm:$0xff]  }
  0x69   :  { %1073 = vmatpush1.bf16.msra.mxu0 %v2752_v18  ;;  %v2793_v41 = vld [vmem:[#allocation7 + $0x10c] ss:$16 sps:$4 sm:$0xff]   ;;  %v2788_v42 = vld [vmem:[#allocation7 + $0x100] ss:$16 sps:$4 sm:$0xff]   ;;  %v2791_v43 = vld [vmem:[#allocation7 + $0x108] ss:$16 sps:$4 sm:$0xff]  }
  0x6a   :  { %1074 = vmatprep.subr.bf16.mxu0 %v2760_v19  ;;  %v2796_v44 = vld [vmem:[#allocation7 + $0x124] ss:$16 sps:$4 sm:$0xff]   ;;  %v2799_v45 = vld [vmem:[#allocation7 + $0x12c] ss:$16 sps:$4 sm:$0xff]   ;;  %v2794_v46 = vld [vmem:[#allocation7 + $0x120] ss:$16 sps:$4 sm:$0xff]  }
  0x6b   :  { %1155 = vmatpush1.bf16.msra.mxu1 %v2755_v20  ;;  %v2797_v47 = vld [vmem:[#allocation7 + $0x128] ss:$16 sps:$4 sm:$0xff]   ;;  %v2802_v48 = vld [vmem:[#allocation7 + $0x144] ss:$16 sps:$4 sm:$0xff]   ;;  %v2805_v49 = vld [vmem:[#allocation7 + $0x14c] ss:$16 sps:$4 sm:$0xff]  }
  0x6c   :  { %1156 = vmatprep.subr.bf16.mxu1 %v2763_v21  ;;  %v2800_v50 = vld [vmem:[#allocation7 + $0x140] ss:$16 sps:$4 sm:$0xff]   ;;  %v2803_v51 = vld [vmem:[#allocation7 + $0x148] ss:$16 sps:$4 sm:$0xff]   ;;  %v2808_v52 = vld [vmem:[#allocation7 + $0x164] ss:$16 sps:$4 sm:$0xff]  }
  0x6d   :  { %1075 = vmatpush1.bf16.msra.mxu0 %v2758_v22  ;;  %v2811_v53 = vld [vmem:[#allocation7 + $0x16c] ss:$16 sps:$4 sm:$0xff]   ;;  %v2806_v54 = vld [vmem:[#allocation7 + $0x160] ss:$16 sps:$4 sm:$0xff]   ;;  %v2809_v55 = vld [vmem:[#allocation7 + $0x168] ss:$16 sps:$4 sm:$0xff]  }
  0x6e   :  { %1076 = vmatprep.subr.bf16.mxu0 %v2766_v23  ;;  %v2814_v56 = vld [vmem:[#allocation7 + $0x184] ss:$16 sps:$4 sm:$0xff]   ;;  %v2817_v57 = vld [vmem:[#allocation7 + $0x18c] ss:$16 sps:$4 sm:$0xff]   ;;  %v2812_v58 = vld [vmem:[#allocation7 + $0x180] ss:$16 sps:$4 sm:$0xff]  }
  0x6f   :  { %1157 = vmatpush1.bf16.msra.mxu1 %v2761_v24  ;;  %v2815_v59 = vld [vmem:[#allocation7 + $0x188] ss:$16 sps:$4 sm:$0xff]   ;;  %v2820_v60 = vld [vmem:[#allocation7 + $0x1a4] ss:$16 sps:$4 sm:$0xff]   ;;  %v2823_v61 = vld [vmem:[#allocation7 + $0x1ac] ss:$16 sps:$4 sm:$0xff]  }
  0x70   :  { %1158 = vmatprep.subr.bf16.mxu1 %v2769_v25  ;;  %v2818_v62 = vld [vmem:[#allocation7 + $0x1a0] ss:$16 sps:$4 sm:$0xff]   ;;  %v2821_v63 = vld [vmem:[#allocation7 + $0x1a8] ss:$16 sps:$4 sm:$0xff]   ;;  %v2826_v1 = vld [vmem:[#allocation7 + $0x1c4] ss:$16 sps:$4 sm:$0xff]  }
  0x71   :  { %1077 = vmatpush1.bf16.msra.mxu0 %v2764_v26  ;;  %v2829_v2 = vld [vmem:[#allocation7 + $0x1cc] ss:$16 sps:$4 sm:$0xff]   ;;  %v2824_v3 = vld [vmem:[#allocation7 + $0x1c0] ss:$16 sps:$4 sm:$0xff]   ;;  %v2827_v4 = vld [vmem:[#allocation7 + $0x1c8] ss:$16 sps:$4 sm:$0xff]  }
  0x72   :  { %1078 = vmatprep.subr.bf16.mxu0 %v2772_v27  ;;  %v2832_v5 = vld [vmem:[#allocation7 + $0x1e4] ss:$16 sps:$4 sm:$0xff]   ;;  %v2835_v6 = vld [vmem:[#allocation7 + $0x1ec] ss:$16 sps:$4 sm:$0xff]   ;;  %v2830_v7 = vld [vmem:[#allocation7 + $0x1e0] ss:$16 sps:$4 sm:$0xff]  }
  0x73   :  { %1159 = vmatpush1.bf16.msra.mxu1 %v2767_v28  ;;  %v2833_v8 = vld [vmem:[#allocation7 + $0x1e8] ss:$16 sps:$4 sm:$0xff]   ;;  %v2838_v9 = vld [vmem:[#allocation7 + $0x204] ss:$16 sps:$4 sm:$0xff]   ;;  %v2841_v10 = vld [vmem:[#allocation7 + $0x20c] ss:$16 sps:$4 sm:$0xff]  }
  0x74   :  { %1160 = vmatprep.subr.bf16.mxu1 %v2775_v30  ;;  %v3491_v12 = vshrl.u32 %v111_v11, 7  ;;  %v3499_v14 = vld [vmem:[%s3617_s2] sm:$0xf] }
  0x75   :  { %1079 = vmatpush1.bf16.msra.mxu0 %v2770_v29  ;;  %v2877_v11 = vld [vmem:[#allocation7 + $0x2cc] ss:$16 sps:$4 sm:$0xff]  }
  0x76   :  { %1080 = vmatprep.subr.bf16.mxu0 %v2778_v32  ;;  %v3494_v13 = vsub.s32 0, %v3491_v12  ;;  %v3502_v15 = vsub.s32 1, %v3491_v12  ;;  %v3505_v16 = vsub.s32 3, %v3491_v12 }
  0x77   :  { %1161 = vmatpush1.bf16.msra.mxu1 %v2773_v31 }
  0x78   :  { %1162 = vmatprep.subr.bf16.mxu1 %v2781_v33  ;;  %v114_v17 = vrot.slane %v3499_v14, %v3494_v13  ;;  %v118_v18 = vrot.slane %v3499_v14, %v3502_v15  ;;  %v126_v20 = vrot.slane %v3499_v14, %v3505_v16 }
  0x79   :  { %1081 = vmatpush1.bf16.msra.mxu0 %v2776_v34 }
  0x7a   :  { %1082 = vmatprep.subr.bf16.mxu0 %v2784_v35 }
  0x7b   :  { %1163 = vmatpush1.bf16.msra.mxu1 %v2779_v36 }
  0x7c   :  { %1164 = vmatprep.subr.bf16.mxu1 %v2787_v37 }
  0x7d   :  { %1083 = vmatpush1.bf16.msra.mxu0 %v2782_v38 }
  0x7e   :  { %1084 = vmatprep.subr.bf16.mxu0 %v2790_v40 }
  0x7f   :  { %1165 = vmatpush1.bf16.msra.mxu1 %v2785_v39 }
  0x80   :  { %1166 = vmatprep.subr.bf16.mxu1 %v2793_v41 }
  0x81   :  { %1085 = vmatpush1.bf16.msra.mxu0 %v2788_v42 }
  0x82   :  { %1086 = vmatprep.subr.bf16.mxu0 %v2796_v44 }
  0x83   :  { %1167 = vmatpush1.bf16.msra.mxu1 %v2791_v43 }
  0x84   :  { %1168 = vmatprep.subr.bf16.mxu1 %v2799_v45 }
  0x85   :  { %1087 = vmatpush1.bf16.msra.mxu0 %v2794_v46  ;;  %v2836_v46 = vld [vmem:[#allocation7 + $0x200] ss:$16 sps:$4 sm:$0xff]  }
  0x86   :  { %1088 = vmatprep.subr.bf16.mxu0 %v2802_v48 }
  0x87   :  { %1169 = vmatpush1.bf16.msra.mxu1 %v2797_v47  ;;  %v2839_v47 = vld [vmem:[#allocation7 + $0x208] ss:$16 sps:$4 sm:$0xff]  }
  0x88   :  { %1170 = vmatprep.subr.bf16.mxu1 %v2805_v49 }
  0x89   :  { %1089 = vmatpush1.bf16.msra.mxu0 %v2800_v50  ;;  %v2844_v50 = vld [vmem:[#allocation7 + $0x224] ss:$16 sps:$4 sm:$0xff]  }
  0x8a   :  { %1090 = vmatprep.subr.bf16.mxu0 %v2808_v52 }
  0x8b   :  { %1171 = vmatpush1.bf16.msra.mxu1 %v2803_v51  ;;  %v2847_v51 = vld [vmem:[#allocation7 + $0x22c] ss:$16 sps:$4 sm:$0xff]  }
  0x8c   :  { %1172 = vmatprep.subr.bf16.mxu1 %v2811_v53  ;;  %v2842_v53 = vld [vmem:[#allocation7 + $0x220] ss:$16 sps:$4 sm:$0xff]  }
  0x8d   :  { %1091 = vmatpush1.bf16.msra.mxu0 %v2806_v54  ;;  %v2845_v54 = vld [vmem:[#allocation7 + $0x228] ss:$16 sps:$4 sm:$0xff]  }
  0x8e   :  { %1092 = vmatprep.subr.bf16.mxu0 %v2814_v56  ;;  %v2853_v56 = vld [vmem:[#allocation7 + $0x24c] ss:$16 sps:$4 sm:$0xff]  }
  0x8f   :  { %1173 = vmatpush1.bf16.msra.mxu1 %v2809_v55  ;;  %v2850_v55 = vld [vmem:[#allocation7 + $0x244] ss:$16 sps:$4 sm:$0xff]  }
  0x90   :  { %1174 = vmatprep.subr.bf16.mxu1 %v2817_v57  ;;  %v2848_v57 = vld [vmem:[#allocation7 + $0x240] ss:$16 sps:$4 sm:$0xff]  }
  0x91   :  { %1093 = vmatpush1.bf16.msra.mxu0 %v2812_v58  ;;  %v2851_v58 = vld [vmem:[#allocation7 + $0x248] ss:$16 sps:$4 sm:$0xff]  }
  0x92   :  { %1094 = vmatprep.subr.bf16.mxu0 %v2820_v60  ;;  %v2859_v60 = vld [vmem:[#allocation7 + $0x26c] ss:$16 sps:$4 sm:$0xff]  }
  0x93   :  { %1175 = vmatpush1.bf16.msra.mxu1 %v2815_v59  ;;  %v2856_v59 = vld [vmem:[#allocation7 + $0x264] ss:$16 sps:$4 sm:$0xff]  }
  0x94   :  { %1176 = vmatprep.subr.bf16.mxu1 %v2823_v61  ;;  %v2854_v61 = vld [vmem:[#allocation7 + $0x260] ss:$16 sps:$4 sm:$0xff]  }
  0x95   :  { %1095 = vmatpush1.bf16.msra.mxu0 %v2818_v62  ;;  %v2857_v62 = vld [vmem:[#allocation7 + $0x268] ss:$16 sps:$4 sm:$0xff]  }
  0x96   :  { %1096 = vmatprep.subr.bf16.mxu0 %v2826_v1  ;;  %v2865_v1 = vld [vmem:[#allocation7 + $0x28c] ss:$16 sps:$4 sm:$0xff]  }
  0x97   :  { %1177 = vmatpush1.bf16.msra.mxu1 %v2821_v63  ;;  %v2862_v63 = vld [vmem:[#allocation7 + $0x284] ss:$16 sps:$4 sm:$0xff]  }
  0x98   :  { %1178 = vmatprep.subr.bf16.mxu1 %v2829_v2  ;;  %v3516_v2 = vsub.s32 2, %v3491_v12 }
  0x99   :  { %1097 = vmatpush1.bf16.msra.mxu0 %v2824_v3  ;;  %v2860_v3 = vld [vmem:[#allocation7 + $0x280] ss:$16 sps:$4 sm:$0xff]  }
  0x9a   :  { %1098 = vmatprep.subr.bf16.mxu0 %v2832_v5  ;;  %v2868_v5 = vld [vmem:[#allocation7 + $0x2a4] ss:$16 sps:$4 sm:$0xff]  }
  0x9b   :  { %1179 = vmatpush1.bf16.msra.mxu1 %v2827_v4  ;;  %v2863_v4 = vld [vmem:[#allocation7 + $0x288] ss:$16 sps:$4 sm:$0xff]  }
  0x9c   :  { %1180 = vmatprep.subr.bf16.mxu1 %v2835_v6  ;;  %v2871_v6 = vld [vmem:[#allocation7 + $0x2ac] ss:$16 sps:$4 sm:$0xff]  }
  0x9d   :  { %1099 = vmatpush1.bf16.msra.mxu0 %v2830_v7  ;;  %v122_v7 = vrot.slane %v3499_v14, %v3516_v2 }
  0x9e   :  { %1109 = vmatprep.subr.bf16.mxu0 %v2838_v9  ;;  %v2869_v9 = vld [vmem:[#allocation7 + $0x2a8] ss:$16 sps:$4 sm:$0xff]  }
  0x9f   :  { %1181 = vmatpush1.bf16.msra.mxu1 %v2833_v8  ;;  %v2866_v8 = vld [vmem:[#allocation7 + $0x2a0] ss:$16 sps:$4 sm:$0xff]  }
  0xa0   :  { %1191 = vmatprep.subr.bf16.mxu1 %v2841_v10  ;;  %v2874_v10 = vld [vmem:[#allocation7 + $0x2c4] ss:$16 sps:$4 sm:$0xff]  }
 0x133   :  { %v198_v19 = vpop.f32.mrb[0].mxu0 }
 0x134   :  { %v199_v21 = vadd.f32 %v198_v19, %v114_v17  ;;  %v200_v22 = vpop.f32.mrb[1].mxu0  ;;  %v2872_v17 = vld [vmem:[#allocation7 + $0x2c0] ss:$16 sps:$4 sm:$0xff]   ;;  %v2880_v19 = vld [vmem:[#allocation7 + $0x2e4] ss:$16 sps:$4 sm:$0xff]  }
 0x135   :  { %v201_v23 = vadd.f32 %v200_v22, %v118_v18  ;;  %v202_v24 = vpop.f32.mrb[2].mxu0  ;;  %v3513_v25 = vpop.f32.mrb[0].mxu1  ;;  %v2875_v18 = vld [vmem:[#allocation7 + $0x2c8] ss:$16 sps:$4 sm:$0xff]  }
 0x136   :  { %v2428_v26 = vmul.f32 -1.442695, %v199_v21  ;;  %v203_v27 = vpop.f32.mrb[3].mxu0  ;;  %v241_v28 = vpop.f32.mrb[1].mxu1  ;;  %v3521_v12 = vadd.f32 %v3513_v25, %v122_v7  ;;  %v2881_v22 = vld [vmem:[#allocation7 + $0x2e8] ss:$16 sps:$4 sm:$0xff]  }
 0x137   :  { %v2429_v29 = vmul.f32 -1.442695, %v201_v23  ;;  %v242_v30 = vadd.f32 %v241_v28, %v126_v20  ;;  %v243_v31 = vpop.f32.mrb[2].mxu1  ;;  %v2883_v20 = vld [vmem:[#allocation7 + $0x2ec] ss:$16 sps:$4 sm:$0xff]  }
 0x138   :  { %3127 = vpow2.f32 %v2428_v26  ;;  %v244_v32 = vpop.f32.mrb[3].mxu1  ;;  %v2430_v14 = vmul.f32 -1.442695, %v3521_v12  ;;  %v2889_v24 = vld [vmem:[#allocation7 + $0x30c] ss:$16 sps:$4 sm:$0xff]  }
 0x139   :  { %3129 = vpow2.f32 %v2429_v29  ;;  %v2431_v33 = vmul.f32 -1.442695, %v242_v30  ;;  %v2884_v25 = vld [vmem:[#allocation7 + $0x300] ss:$16 sps:$4 sm:$0xff]   ;;  %v2887_v26 = vld [vmem:[#allocation7 + $0x308] ss:$16 sps:$4 sm:$0xff]  }
 0x13a   :  { %v2892_v27 = vld [vmem:[#allocation7 + $0x324] ss:$16 sps:$4 sm:$0xff]   ;;  %v2895_v28 = vld [vmem:[#allocation7 + $0x32c] ss:$16 sps:$4 sm:$0xff]   ;;  %v2890_v29 = vld [vmem:[#allocation7 + $0x320] ss:$16 sps:$4 sm:$0xff]  }
 0x13b   :  { %3131 = vpow2.f32 %v2431_v33  ;;  %v2898_v31 = vld [vmem:[#allocation7 + $0x344] ss:$16 sps:$4 sm:$0xff]   ;;  %v2901_v32 = vld [vmem:[#allocation7 + $0x34c] ss:$16 sps:$4 sm:$0xff]   ;;  %v2896_v33 = vld [vmem:[#allocation7 + $0x340] ss:$16 sps:$4 sm:$0xff]  }
 0x13c   :  { %v2949_v7 = vld [vmem:[#allocation8 + $0x4c] ss:$16 sps:$4 sm:$0xff]  }
 0x142   :  { %v3128_v34 = vpop.eup %3127 }
 0x143   :  { %v3130_v35 = vpop.eup %3129  ;;  %v258_v36 = vadd.f32 1.0, %v3128_v34  ;;  %v2899_v34 = vld [vmem:[#allocation7 + $0x348] ss:$16 sps:$4 sm:$0xff]  }
 0x144   :  { %v259_v37 = vadd.f32 1.0, %v3130_v35 }
 0x145   :  { %v3132_v38 = vpop.eup %3131  ;;  %3133 = vrcp.f32 %v258_v36  ;;  %v2904_v36 = vld [vmem:[#allocation7 + $0x364] ss:$16 sps:$4 sm:$0xff]  }
 0x146   :  { %3135 = vrcp.f32 %v259_v37  ;;  %v261_v39 = vadd.f32 1.0, %v3132_v38  ;;  %v2907_v37 = vld [vmem:[#allocation7 + $0x36c] ss:$16 sps:$4 sm:$0xff]  }
 0x148   :  { %3137 = vrcp.f32 %v261_v39  ;;  %v2902_v39 = vld [vmem:[#allocation7 + $0x360] ss:$16 sps:$4 sm:$0xff]  }
 0x149   :  { %3139 = vpow2.f32 %v2430_v14  ;;  %v2959_v14 = vld [vmem:[#allocation8 + $0x88] ss:$16 sps:$4 sm:$0xff]  }
 0x14f   :  { %v3134_v40 = vpop.eup %3133 }
 0x150   :  { %v3136_v41 = vpop.eup %3135  ;;  %v270_v42 = vmul.f32 %v3134_v40, %v199_v21  ;;  %v2878_v21 = vld [vmem:[#allocation7 + $0x2e0] ss:$16 sps:$4 sm:$0xff]   ;;  %v2905_v40 = vld [vmem:[#allocation7 + $0x368] ss:$16 sps:$4 sm:$0xff]  }
 0x151   :  { %v271_v43 = vmul.f32 %v3136_v41, %v201_v23  ;;  %v2886_v23 = vld [vmem:[#allocation7 + $0x304] ss:$16 sps:$4 sm:$0xff]  }
 0x152   :  { %v3138_v44 = vpop.eup %3137  ;;  %v274_v49 = vpack.c.bf16 %v270_v42, %v270_v42  ;;  %v2910_v41 = vld [vmem:[#allocation7 + $0x384] ss:$16 sps:$4 sm:$0xff]   ;;  %v2913_v42 = vld [vmem:[#allocation7 + $0x38c] ss:$16 sps:$4 sm:$0xff]  }
 0x153   :  { %v275_v45 = vpack.c.bf16 %v271_v43, %v271_v43  ;;  %v273_v48 = vmul.f32 %v3138_v44, %v242_v30  ;;  %v2893_v30 = vld [vmem:[#allocation7 + $0x328] ss:$16 sps:$4 sm:$0xff]   ;;  %v3140_v35 = vpop.eup %3139  ;;  %v2908_v43 = vld [vmem:[#allocation7 + $0x380] ss:$16 sps:$4 sm:$0xff]  }
 0x154   :  { %v260_v38 = vadd.f32 1.0, %v3140_v35  ;;  %v2911_v44 = vld [vmem:[#allocation7 + $0x388] ss:$16 sps:$4 sm:$0xff]   ;;  %v2980_v35 = vld [vmem:[#allocation8 + $0x100] ss:$16 sps:$4 sm:$0xff]  }
 0x155   :  { %1100 = vmatprep.mubr.bf16.mxu0 %v275_v45  ;;  %1182 = vmatprep.mubr.bf16.mxu1 %v275_v45  ;;  %v277_v52 = vpack.c.bf16 %v273_v48, %v273_v48  ;;  %v2916_v45 = vld [vmem:[#allocation7 + $0x3a4] ss:$16 sps:$4 sm:$0xff]   ;;  %v2917_v48 = vld [vmem:[#allocation7 + $0x3a8] ss:$16 sps:$4 sm:$0xff]  }
 0x156   :  { %1101 = vmatmul.mubr.bf16.vlgmr.msra.gmra.mrb[4].mxu0 %v274_v49  ;;  %1183 = vmatmul.mubr.bf16.vlgmr.msra.gmra.mrb[4].mxu1 %v274_v49  ;;  %3141 = vrcp.f32 %v260_v38  ;;  %v2922_v49 = vld [vmem:[#allocation7 + $0x3c4] ss:$16 sps:$4 sm:$0xff]   ;;  %v2991_v38 = vld [vmem:[#allocation8 + $0x12c] ss:$16 sps:$4 sm:$0xff]  }
 0x157   :  { %1110 = vmatpush1.bf16.msra.mxu0 %v2836_v46  ;;  %1192 = vmatpush1.bf16.msra.mxu1 %v2839_v47  ;;  %v2919_v46 = vld [vmem:[#allocation7 + $0x3ac] ss:$16 sps:$4 sm:$0xff]   ;;  %v2914_v47 = vld [vmem:[#allocation7 + $0x3a0] ss:$16 sps:$4 sm:$0xff]  }
 0x158   :  { %1111 = vmatprep.subr.bf16.mxu0 %v2844_v50  ;;  %1193 = vmatprep.subr.bf16.mxu1 %v2847_v51  ;;  %v2925_v50 = vld [vmem:[#allocation7 + $0x3cc] ss:$16 sps:$4 sm:$0xff]   ;;  %v2920_v51 = vld [vmem:[#allocation7 + $0x3c0] ss:$16 sps:$4 sm:$0xff]  }
 0x159   :  { %1141 = vmatprep.mubr.bf16.mxu0 %v277_v52  ;;  %1223 = vmatprep.mubr.bf16.mxu1 %v277_v52  ;;  %v2923_v52 = vld [vmem:[#allocation7 + $0x3c8] ss:$16 sps:$4 sm:$0xff]  }
 0x15b   :  { %1112 = vmatpush1.bf16.msra.mxu0 %v2842_v53  ;;  %1194 = vmatpush1.bf16.msra.mxu1 %v2845_v54  ;;  %v2928_v53 = vld [vmem:[#allocation7 + $0x3e4] ss:$16 sps:$4 sm:$0xff]   ;;  %v2931_v54 = vld [vmem:[#allocation7 + $0x3ec] ss:$16 sps:$4 sm:$0xff]  }
 0x15c   :  { %1113 = vmatprep.subr.bf16.mxu0 %v2850_v55  ;;  %1195 = vmatprep.subr.bf16.mxu1 %v2853_v56  ;;  %v2926_v56 = vld [vmem:[#allocation7 + $0x3e0] ss:$16 sps:$4 sm:$0xff]  }
 0x15f   :  { %1114 = vmatpush1.bf16.msra.mxu0 %v2848_v57  ;;  %1196 = vmatpush1.bf16.msra.mxu1 %v2851_v58  ;;  %v2929_v57 = vld [vmem:[#allocation7 + $0x3e8] ss:$16 sps:$4 sm:$0xff]  }
 0x160   :  { %1115 = vmatprep.subr.bf16.mxu0 %v2856_v59  ;;  %1197 = vmatprep.subr.bf16.mxu1 %v2859_v60  ;;  %v3142_v55 = vpop.eup %3141  ;;  %v2934_v59 = vld [vmem:[#allocation8 + $0x4] ss:$16 sps:$4 sm:$0xff]   ;;  %v2937_v60 = vld [vmem:[#allocation8 + $0xc] ss:$16 sps:$4 sm:$0xff]  }
 0x161   :  { %v272_v58 = vmul.f32 %v3142_v55, %v3521_v12  ;;  %v2950_v12 = vld [vmem:[#allocation8 + $0x60] ss:$16 sps:$4 sm:$0xff]  }
 0x162   :  { %v3010_v55 = vld [vmem:[#allocation8 + $0x1a0] ss:$16 sps:$4 sm:$0xff]  }
 0x163   :  { %1116 = vmatpush1.bf16.msra.mxu0 %v2854_v61  ;;  %1198 = vmatpush1.bf16.msra.mxu1 %v2857_v62  ;;  %v2932_v61 = vld [vmem:[#allocation8] ss:$16 sps:$4 sm:$0xff]   ;;  %v2935_v62 = vld [vmem:[#allocation8 + $0x8] ss:$16 sps:$4 sm:$0xff]  }
 0x164   :  { %1117 = vmatprep.subr.bf16.mxu0 %v2862_v63  ;;  %1199 = vmatprep.subr.bf16.mxu1 %v2865_v1  ;;  %v276_v63 = vpack.c.bf16 %v272_v58, %v272_v58  ;;  %v2940_v1 = vld [vmem:[#allocation8 + $0x24] ss:$16 sps:$4 sm:$0xff]   ;;  %v3021_v58 = vld [vmem:[#allocation8 + $0x1cc] ss:$16 sps:$4 sm:$0xff]  }
 0x167   :  { %1118 = vmatpush1.bf16.msra.mxu0 %v2860_v3  ;;  %1200 = vmatpush1.bf16.msra.mxu1 %v2863_v4  ;;  %v2943_v3 = vld [vmem:[#allocation8 + $0x2c] ss:$16 sps:$4 sm:$0xff]   ;;  %v2938_v4 = vld [vmem:[#allocation8 + $0x20] ss:$16 sps:$4 sm:$0xff]  }
 0x168   :  { %1119 = vmatprep.subr.bf16.mxu0 %v2868_v5  ;;  %1201 = vmatprep.subr.bf16.mxu1 %v2871_v6  ;;  %v2941_v5 = vld [vmem:[#allocation8 + $0x28] ss:$16 sps:$4 sm:$0xff]   ;;  %v2946_v6 = vld [vmem:[#allocation8 + $0x44] ss:$16 sps:$4 sm:$0xff]  }
 0x16b   :  { %1120 = vmatpush1.bf16.msra.mxu0 %v2866_v8  ;;  %1202 = vmatpush1.bf16.msra.mxu1 %v2869_v9  ;;  %v2944_v8 = vld [vmem:[#allocation8 + $0x40] ss:$16 sps:$4 sm:$0xff]   ;;  %v2947_v9 = vld [vmem:[#allocation8 + $0x48] ss:$16 sps:$4 sm:$0xff]  }
 0x16c   :  { %1121 = vmatprep.subr.bf16.mxu0 %v2874_v10  ;;  %1203 = vmatprep.subr.bf16.mxu1 %v2877_v11  ;;  %v2952_v10 = vld [vmem:[#allocation8 + $0x64] ss:$16 sps:$4 sm:$0xff]   ;;  %v2955_v11 = vld [vmem:[#allocation8 + $0x6c] ss:$16 sps:$4 sm:$0xff]  }
 0x16f   :  { %1122 = vmatpush1.bf16.msra.mxu0 %v2872_v17  ;;  %1204 = vmatpush1.bf16.msra.mxu1 %v2875_v18  ;;  %v2953_v17 = vld [vmem:[#allocation8 + $0x68] ss:$16 sps:$4 sm:$0xff]   ;;  %v2958_v18 = vld [vmem:[#allocation8 + $0x84] ss:$16 sps:$4 sm:$0xff]  }
 0x170   :  { %1123 = vmatprep.subr.bf16.mxu0 %v2880_v19  ;;  %1205 = vmatprep.subr.bf16.mxu1 %v2883_v20  ;;  %v2961_v19 = vld [vmem:[#allocation8 + $0x8c] ss:$16 sps:$4 sm:$0xff]   ;;  %v2956_v20 = vld [vmem:[#allocation8 + $0x80] ss:$16 sps:$4 sm:$0xff]  }
 0x173   :  { %1124 = vmatpush1.bf16.msra.mxu0 %v2878_v21  ;;  %1206 = vmatpush1.bf16.msra.mxu1 %v2881_v22  ;;  %v2964_v21 = vld [vmem:[#allocation8 + $0xa4] ss:$16 sps:$4 sm:$0xff]   ;;  %v2967_v22 = vld [vmem:[#allocation8 + $0xac] ss:$16 sps:$4 sm:$0xff]  }
 0x174   :  { %1125 = vmatprep.subr.bf16.mxu0 %v2886_v23  ;;  %1207 = vmatprep.subr.bf16.mxu1 %v2889_v24  ;;  %v2962_v23 = vld [vmem:[#allocation8 + $0xa0] ss:$16 sps:$4 sm:$0xff]   ;;  %v2965_v24 = vld [vmem:[#allocation8 + $0xa8] ss:$16 sps:$4 sm:$0xff]  }
 0x177   :  { %1126 = vmatpush1.bf16.msra.mxu0 %v2884_v25  ;;  %1208 = vmatpush1.bf16.msra.mxu1 %v2887_v26  ;;  %v2970_v25 = vld [vmem:[#allocation8 + $0xc4] ss:$16 sps:$4 sm:$0xff]   ;;  %v2973_v26 = vld [vmem:[#allocation8 + $0xcc] ss:$16 sps:$4 sm:$0xff]  }
 0x178   :  { %1127 = vmatprep.subr.bf16.mxu0 %v2892_v27  ;;  %1209 = vmatprep.subr.bf16.mxu1 %v2895_v28  ;;  %v2968_v27 = vld [vmem:[#allocation8 + $0xc0] ss:$16 sps:$4 sm:$0xff]   ;;  %v2971_v28 = vld [vmem:[#allocation8 + $0xc8] ss:$16 sps:$4 sm:$0xff]  }
 0x17b   :  { %1128 = vmatpush1.bf16.msra.mxu0 %v2890_v29  ;;  %1210 = vmatpush1.bf16.msra.mxu1 %v2893_v30  ;;  %v2976_v29 = vld [vmem:[#allocation8 + $0xe4] ss:$16 sps:$4 sm:$0xff]   ;;  %v2979_v30 = vld [vmem:[#allocation8 + $0xec] ss:$16 sps:$4 sm:$0xff]  }
 0x17c   :  { %1129 = vmatprep.subr.bf16.mxu0 %v2898_v31  ;;  %1211 = vmatprep.subr.bf16.mxu1 %v2901_v32  ;;  %v2974_v31 = vld [vmem:[#allocation8 + $0xe0] ss:$16 sps:$4 sm:$0xff]   ;;  %v2977_v32 = vld [vmem:[#allocation8 + $0xe8] ss:$16 sps:$4 sm:$0xff]  }
 0x17f   :  { %1130 = vmatpush1.bf16.msra.mxu0 %v2896_v33  ;;  %1212 = vmatpush1.bf16.msra.mxu1 %v2899_v34  ;;  %v2982_v33 = vld [vmem:[#allocation8 + $0x104] ss:$16 sps:$4 sm:$0xff]   ;;  %v2985_v34 = vld [vmem:[#allocation8 + $0x10c] ss:$16 sps:$4 sm:$0xff]  }
 0x180   :  { %1131 = vmatprep.subr.bf16.mxu0 %v2904_v36  ;;  %1213 = vmatprep.subr.bf16.mxu1 %v2907_v37  ;;  %v2983_v36 = vld [vmem:[#allocation8 + $0x108] ss:$16 sps:$4 sm:$0xff]   ;;  %v2988_v37 = vld [vmem:[#allocation8 + $0x124] ss:$16 sps:$4 sm:$0xff]  }
 0x183   :  { %1132 = vmatpush1.bf16.msra.mxu0 %v2902_v39  ;;  %1214 = vmatpush1.bf16.msra.mxu1 %v2905_v40  ;;  %v2986_v39 = vld [vmem:[#allocation8 + $0x120] ss:$16 sps:$4 sm:$0xff]   ;;  %v2989_v40 = vld [vmem:[#allocation8 + $0x128] ss:$16 sps:$4 sm:$0xff]  }
 0x184   :  { %1133 = vmatprep.subr.bf16.mxu0 %v2910_v41  ;;  %1215 = vmatprep.subr.bf16.mxu1 %v2913_v42  ;;  %v2994_v41 = vld [vmem:[#allocation8 + $0x144] ss:$16 sps:$4 sm:$0xff]   ;;  %v2997_v42 = vld [vmem:[#allocation8 + $0x14c] ss:$16 sps:$4 sm:$0xff]  }
 0x187   :  { %1134 = vmatpush1.bf16.msra.mxu0 %v2908_v43  ;;  %1216 = vmatpush1.bf16.msra.mxu1 %v2911_v44  ;;  %v2992_v43 = vld [vmem:[#allocation8 + $0x140] ss:$16 sps:$4 sm:$0xff]   ;;  %v2995_v44 = vld [vmem:[#allocation8 + $0x148] ss:$16 sps:$4 sm:$0xff]  }
 0x188   :  { %1135 = vmatprep.subr.bf16.mxu0 %v2916_v45  ;;  %1217 = vmatprep.subr.bf16.mxu1 %v2919_v46  ;;  %v3000_v45 = vld [vmem:[#allocation8 + $0x164] ss:$16 sps:$4 sm:$0xff]   ;;  %v3003_v46 = vld [vmem:[#allocation8 + $0x16c] ss:$16 sps:$4 sm:$0xff]  }
 0x18b   :  { %1136 = vmatpush1.bf16.msra.mxu0 %v2914_v47  ;;  %1218 = vmatpush1.bf16.msra.mxu1 %v2917_v48  ;;  %v2998_v47 = vld [vmem:[#allocation8 + $0x160] ss:$16 sps:$4 sm:$0xff]   ;;  %v3001_v48 = vld [vmem:[#allocation8 + $0x168] ss:$16 sps:$4 sm:$0xff]  }
 0x18c   :  { %1137 = vmatprep.subr.bf16.mxu0 %v2922_v49  ;;  %1219 = vmatprep.subr.bf16.mxu1 %v2925_v50  ;;  %v3006_v49 = vld [vmem:[#allocation8 + $0x184] ss:$16 sps:$4 sm:$0xff]   ;;  %v3009_v50 = vld [vmem:[#allocation8 + $0x18c] ss:$16 sps:$4 sm:$0xff]  }
 0x18f   :  { %1138 = vmatpush1.bf16.msra.mxu0 %v2920_v51  ;;  %1220 = vmatpush1.bf16.msra.mxu1 %v2923_v52  ;;  %v3004_v51 = vld [vmem:[#allocation8 + $0x180] ss:$16 sps:$4 sm:$0xff]   ;;  %v3007_v52 = vld [vmem:[#allocation8 + $0x188] ss:$16 sps:$4 sm:$0xff]  }
 0x190   :  { %1139 = vmatprep.subr.bf16.mxu0 %v2928_v53  ;;  %1221 = vmatprep.subr.bf16.mxu1 %v2931_v54  ;;  %v3012_v53 = vld [vmem:[#allocation8 + $0x1a4] ss:$16 sps:$4 sm:$0xff]   ;;  %v3015_v54 = vld [vmem:[#allocation8 + $0x1ac] ss:$16 sps:$4 sm:$0xff]  }
 0x193   :  { %1140 = vmatpush1.bf16.msra.mxu0 %v2926_v56  ;;  %1222 = vmatpush1.bf16.msra.mxu1 %v2929_v57  ;;  %v3013_v56 = vld [vmem:[#allocation8 + $0x1a8] ss:$16 sps:$4 sm:$0xff]   ;;  %v3018_v57 = vld [vmem:[#allocation8 + $0x1c4] ss:$16 sps:$4 sm:$0xff]  }
 0x194   :  { %2054 = vmatprep.subr.bf16.mxu0 %v2934_v59  ;;  %2136 = vmatprep.subr.bf16.mxu1 %v2937_v60  ;;  %v3016_v59 = vld [vmem:[#allocation8 + $0x1c0] ss:$16 sps:$4 sm:$0xff]   ;;  %v3019_v60 = vld [vmem:[#allocation8 + $0x1c8] ss:$16 sps:$4 sm:$0xff]  }
 0x196   :  { %1142 = vmatmul.mubr.bf16.vlgmr.msra.gmra.mrb[4].mxu0 %v276_v63  ;;  %1224 = vmatmul.mubr.bf16.vlgmr.msra.gmra.mrb[4].mxu1 %v276_v63  ;;  %v3022_v63 = vld [vmem:[#allocation8 + $0x1e0] ss:$16 sps:$4 sm:$0xff]  }
 0x197   :  { %2055 = vmatpush1.bf16.msra.mxu0 %v2932_v61  ;;  %2137 = vmatpush1.bf16.msra.mxu1 %v2935_v62  ;;  %v3024_v61 = vld [vmem:[#allocation8 + $0x1e4] ss:$16 sps:$4 sm:$0xff]   ;;  %v3027_v62 = vld [vmem:[#allocation8 + $0x1ec] ss:$16 sps:$4 sm:$0xff]  }
 0x198   :  { %2056 = vmatprep.subr.bf16.mxu0 %v2940_v1  ;;  %2138 = vmatprep.subr.bf16.mxu1 %v2943_v3  ;;  %v3025_v1 = vld [vmem:[#allocation8 + $0x1e8] ss:$16 sps:$4 sm:$0xff]   ;;  %v3030_v3 = vld [vmem:[#allocation8 + $0x204] ss:$16 sps:$4 sm:$0xff]  }
 0x19b   :  { %2057 = vmatpush1.bf16.msra.mxu0 %v2938_v4  ;;  %2139 = vmatpush1.bf16.msra.mxu1 %v2941_v5  ;;  %v3033_v4 = vld [vmem:[#allocation8 + $0x20c] ss:$16 sps:$4 sm:$0xff]  }
 0x19c   :  { %2058 = vmatprep.subr.bf16.mxu0 %v2946_v6  ;;  %2140 = vmatprep.subr.bf16.mxu1 %v2949_v7  ;;  %v3528_v5 = vld [vmem:[%s3619_s4] sm:$0xf] }
 0x19d   :  { %v411_v6 = vrot.slane %v3528_v5, %v3494_v13  ;;  %v415_v7 = vrot.slane %v3528_v5, %v3502_v15 }
 0x19f   :  { %2059 = vmatpush1.bf16.msra.mxu0 %v2944_v8  ;;  %2141 = vmatpush1.bf16.msra.mxu1 %v2947_v9  ;;  %v423_v8 = vrot.slane %v3528_v5, %v3505_v16 }
 0x1a0   :  { %2060 = vmatprep.subr.bf16.mxu0 %v2952_v10  ;;  %2142 = vmatprep.subr.bf16.mxu1 %v2955_v11 }
 0x1a3   :  { %2061 = vmatpush1.bf16.msra.mxu0 %v2950_v12  ;;  %2143 = vmatpush1.bf16.msra.mxu1 %v2953_v17 }
 0x1a4   :  { %2062 = vmatprep.subr.bf16.mxu0 %v2958_v18  ;;  %2144 = vmatprep.subr.bf16.mxu1 %v2961_v19 }
 0x1a7   :  { %2063 = vmatpush1.bf16.msra.mxu0 %v2956_v20  ;;  %2145 = vmatpush1.bf16.msra.mxu1 %v2959_v14 }
 0x1a8   :  { %2064 = vmatprep.subr.bf16.mxu0 %v2964_v21  ;;  %2146 = vmatprep.subr.bf16.mxu1 %v2967_v22 }
 0x1ab   :  { %2065 = vmatpush1.bf16.msra.mxu0 %v2962_v23  ;;  %2147 = vmatpush1.bf16.msra.mxu1 %v2965_v24 }
 0x1ac   :  { %2066 = vmatprep.subr.bf16.mxu0 %v2970_v25  ;;  %2148 = vmatprep.subr.bf16.mxu1 %v2973_v26 }
 0x1af   :  { %2067 = vmatpush1.bf16.msra.mxu0 %v2968_v27  ;;  %2149 = vmatpush1.bf16.msra.mxu1 %v2971_v28 }
 0x1b0   :  { %2068 = vmatprep.subr.bf16.mxu0 %v2976_v29  ;;  %2150 = vmatprep.subr.bf16.mxu1 %v2979_v30 }
 0x1b3   :  { %2069 = vmatpush1.bf16.msra.mxu0 %v2974_v31  ;;  %2151 = vmatpush1.bf16.msra.mxu1 %v2977_v32 }
 0x1b4   :  { %2070 = vmatprep.subr.bf16.mxu0 %v2982_v33  ;;  %2152 = vmatprep.subr.bf16.mxu1 %v2985_v34 }
 0x1b7   :  { %2071 = vmatpush1.bf16.msra.mxu0 %v2980_v35  ;;  %2153 = vmatpush1.bf16.msra.mxu1 %v2983_v36 }
 0x1b8   :  { %2072 = vmatprep.subr.bf16.mxu0 %v2988_v37  ;;  %2154 = vmatprep.subr.bf16.mxu1 %v2991_v38 }
 0x1bb   :  { %2073 = vmatpush1.bf16.msra.mxu0 %v2986_v39  ;;  %2155 = vmatpush1.bf16.msra.mxu1 %v2989_v40  ;;  %v3028_v39 = vld [vmem:[#allocation8 + $0x200] ss:$16 sps:$4 sm:$0xff]   ;;  %v3031_v40 = vld [vmem:[#allocation8 + $0x208] ss:$16 sps:$4 sm:$0xff]  }
 0x1bc   :  { %2074 = vmatprep.subr.bf16.mxu0 %v2994_v41  ;;  %2156 = vmatprep.subr.bf16.mxu1 %v2997_v42  ;;  %v3036_v42 = vld [vmem:[#allocation8 + $0x224] ss:$16 sps:$4 sm:$0xff]  }
 0x1bf   :  { %2075 = vmatpush1.bf16.msra.mxu0 %v2992_v43  ;;  %2157 = vmatpush1.bf16.msra.mxu1 %v2995_v44  ;;  %v3039_v43 = vld [vmem:[#allocation8 + $0x22c] ss:$16 sps:$4 sm:$0xff]  }
 0x1c0   :  { %2076 = vmatprep.subr.bf16.mxu0 %v3000_v45  ;;  %2158 = vmatprep.subr.bf16.mxu1 %v3003_v46  ;;  %v3034_v45 = vld [vmem:[#allocation8 + $0x220] ss:$16 sps:$4 sm:$0xff]   ;;  %v3037_v46 = vld [vmem:[#allocation8 + $0x228] ss:$16 sps:$4 sm:$0xff]  }
 0x1c3   :  { %2077 = vmatpush1.bf16.msra.mxu0 %v2998_v47  ;;  %2159 = vmatpush1.bf16.msra.mxu1 %v3001_v48  ;;  %v3042_v47 = vld [vmem:[#allocation8 + $0x244] ss:$16 sps:$4 sm:$0xff]   ;;  %v3045_v48 = vld [vmem:[#allocation8 + $0x24c] ss:$16 sps:$4 sm:$0xff]  }
 0x1c4   :  { %2078 = vmatprep.subr.bf16.mxu0 %v3006_v49  ;;  %2160 = vmatprep.subr.bf16.mxu1 %v3009_v50  ;;  %v3040_v49 = vld [vmem:[#allocation8 + $0x240] ss:$16 sps:$4 sm:$0xff]   ;;  %v3043_v50 = vld [vmem:[#allocation8 + $0x248] ss:$16 sps:$4 sm:$0xff]  }
 0x1c7   :  { %2079 = vmatpush1.bf16.msra.mxu0 %v3004_v51  ;;  %2161 = vmatpush1.bf16.msra.mxu1 %v3007_v52  ;;  %v3048_v51 = vld [vmem:[#allocation8 + $0x264] ss:$16 sps:$4 sm:$0xff]   ;;  %v3051_v52 = vld [vmem:[#allocation8 + $0x26c] ss:$16 sps:$4 sm:$0xff]  }
 0x1c8   :  { %2080 = vmatprep.subr.bf16.mxu0 %v3012_v53  ;;  %2162 = vmatprep.subr.bf16.mxu1 %v3015_v54  ;;  %v3046_v53 = vld [vmem:[#allocation8 + $0x260] ss:$16 sps:$4 sm:$0xff]   ;;  %v3049_v54 = vld [vmem:[#allocation8 + $0x268] ss:$16 sps:$4 sm:$0xff]  }
 0x1cb   :  { %2081 = vmatpush1.bf16.msra.mxu0 %v3010_v55  ;;  %2163 = vmatpush1.bf16.msra.mxu1 %v3013_v56  ;;  %v3054_v55 = vld [vmem:[#allocation8 + $0x284] ss:$16 sps:$4 sm:$0xff]   ;;  %v3057_v56 = vld [vmem:[#allocation8 + $0x28c] ss:$16 sps:$4 sm:$0xff]  }
 0x1cc   :  { %2082 = vmatprep.subr.bf16.mxu0 %v3018_v57  ;;  %2164 = vmatprep.subr.bf16.mxu1 %v3021_v58  ;;  %v3052_v57 = vld [vmem:[#allocation8 + $0x280] ss:$16 sps:$4 sm:$0xff]   ;;  %v3055_v58 = vld [vmem:[#allocation8 + $0x288] ss:$16 sps:$4 sm:$0xff]  }
 0x1cf   :  { %2083 = vmatpush1.bf16.msra.mxu0 %v3016_v59  ;;  %2165 = vmatpush1.bf16.msra.mxu1 %v3019_v60  ;;  %v3060_v59 = vld [vmem:[#allocation8 + $0x2a4] ss:$16 sps:$4 sm:$0xff]   ;;  %v3063_v60 = vld [vmem:[#allocation8 + $0x2ac] ss:$16 sps:$4 sm:$0xff]  }
 0x1d0   :  { %2084 = vmatprep.subr.bf16.mxu0 %v3024_v61  ;;  %2166 = vmatprep.subr.bf16.mxu1 %v3027_v62  ;;  %v419_v61 = vrot.slane %v3528_v5, %v3516_v2  ;;  %v3058_v62 = vld [vmem:[#allocation8 + $0x2a0] ss:$16 sps:$4 sm:$0xff]  }
 0x1d3   :  { %2085 = vmatpush1.bf16.msra.mxu0 %v3022_v63  ;;  %2167 = vmatpush1.bf16.msra.mxu1 %v3025_v1  ;;  %v3061_v63 = vld [vmem:[#allocation8 + $0x2a8] ss:$16 sps:$4 sm:$0xff]   ;;  %v3066_v1 = vld [vmem:[#allocation8 + $0x2c4] ss:$16 sps:$4 sm:$0xff]  }
 0x1d4   :  { %2095 = vmatprep.subr.bf16.mxu0 %v3030_v3  ;;  %2177 = vmatprep.subr.bf16.mxu1 %v3033_v4  ;;  %v3069_v3 = vld [vmem:[#allocation8 + $0x2cc] ss:$16 sps:$4 sm:$0xff]  }
 0x269   :  { %v1143_v9 = vpop.f32.mrb[4].mxu0  ;;  %v3536_v10 = vpop.f32.mrb[4].mxu1 }
 0x26a   :  { %v2696_v11 = vadd.f32 %v1143_v9, %v411_v6  ;;  %v1145_v12 = vpop.f32.mrb[5].mxu0  ;;  %v1227_v17 = vpop.f32.mrb[5].mxu1  ;;  %v3541_v4 = vadd.f32 %v3536_v10, %v419_v61  ;;  %v3064_v6 = vld [vmem:[#allocation8 + $0x2c0] ss:$16 sps:$4 sm:$0xff]   ;;  %v3075_v9 = vld [vmem:[#allocation8 + $0x2ec] ss:$16 sps:$4 sm:$0xff]  }
 0x26b   :  { %v2697_v18 = vadd.f32 %v1145_v12, %v415_v7  ;;  %v2699_v19 = vadd.f32 %v1227_v17, %v423_v8  ;;  %v1147_v20 = vpop.f32.mrb[6].mxu0  ;;  %v1229_v14 = vpop.f32.mrb[6].mxu1  ;;  %v3067_v7 = vld [vmem:[#allocation8 + $0x2c8] ss:$16 sps:$4 sm:$0xff]   ;;  %v3072_v8 = vld [vmem:[#allocation8 + $0x2e4] ss:$16 sps:$4 sm:$0xff]  }
 0x26c   :  { %v2560_v21 = vmul.f32 -1.442695, %v2696_v11  ;;  %v1148_v22 = vpop.f32.mrb[7].mxu0  ;;  %v1230_v23 = vpop.f32.mrb[7].mxu1  ;;  %v2562_v5 = vmul.f32 -1.442695, %v3541_v4 }
 0x26d   :  { %v2561_v24 = vmul.f32 -1.442695, %v2697_v18  ;;  %v2563_v25 = vmul.f32 -1.442695, %v2699_v19  ;;  %v3073_v12 = vld [vmem:[#allocation8 + $0x2e8] ss:$16 sps:$4 sm:$0xff]  }
 0x26e   :  { %3143 = vpow2.f32 %v2560_v21  ;;  %v3078_v17 = vld [vmem:[#allocation8 + $0x304] ss:$16 sps:$4 sm:$0xff]   ;;  %v3076_v10 = vld [vmem:[#allocation8 + $0x300] ss:$16 sps:$4 sm:$0xff]   ;;  %v3087_v14 = vld [vmem:[#allocation8 + $0x32c] ss:$16 sps:$4 sm:$0xff]  }
 0x26f   :  { %3145 = vpow2.f32 %v2561_v24  ;;  %v3084_v20 = vld [vmem:[#allocation8 + $0x324] ss:$16 sps:$4 sm:$0xff]   ;;  %v3082_v21 = vld [vmem:[#allocation8 + $0x320] ss:$16 sps:$4 sm:$0xff]   ;;  %v3085_v22 = vld [vmem:[#allocation8 + $0x328] ss:$16 sps:$4 sm:$0xff]  }
 0x270   :  { %3147 = vpow2.f32 %v2563_v25  ;;  %v3090_v23 = vld [vmem:[#allocation8 + $0x344] ss:$16 sps:$4 sm:$0xff]   ;;  %v3093_v24 = vld [vmem:[#allocation8 + $0x34c] ss:$16 sps:$4 sm:$0xff]   ;;  %v3088_v25 = vld [vmem:[#allocation8 + $0x340] ss:$16 sps:$4 sm:$0xff]  }
 0x278   :  { %v3144_v26 = vpop.eup %3143 }
 0x279   :  { %v1244_v27 = vadd.f32 1.0, %v3144_v26  ;;  %v3146_v28 = vpop.eup %3145  ;;  %v3091_v26 = vld [vmem:[#allocation8 + $0x348] ss:$16 sps:$4 sm:$0xff]  }
 0x27a   :  { %v3148_v29 = vpop.eup %3147  ;;  %v1245_v30 = vadd.f32 1.0, %v3146_v28  ;;  %v3096_v28 = vld [vmem:[#allocation8 + $0x364] ss:$16 sps:$4 sm:$0xff]  }
 0x27b   :  { %3149 = vrcp.f32 %v1244_v27  ;;  %v1247_v31 = vadd.f32 1.0, %v3148_v29  ;;  %v3099_v29 = vld [vmem:[#allocation8 + $0x36c] ss:$16 sps:$4 sm:$0xff]  }
 0x27c   :  { %3151 = vrcp.f32 %v1245_v30 }
 0x27d   :  { %3153 = vrcp.f32 %v1247_v31  ;;  %v3094_v31 = vld [vmem:[#allocation8 + $0x360] ss:$16 sps:$4 sm:$0xff]  }
 0x27e   :  { %3155 = vpow2.f32 %v2562_v5 }
 0x285   :  { %v3150_v32 = vpop.eup %3149 }
 0x286   :  { %v3152_v33 = vpop.eup %3151  ;;  %v1256_v34 = vmul.f32 %v3150_v32, %v2696_v11  ;;  %v3070_v11 = vld [vmem:[#allocation8 + $0x2e0] ss:$16 sps:$4 sm:$0xff]   ;;  %v3097_v32 = vld [vmem:[#allocation8 + $0x368] ss:$16 sps:$4 sm:$0xff]  }
 0x287   :  { %v3154_v35 = vpop.eup %3153  ;;  %v1257_v36 = vmul.f32 %v3152_v33, %v2697_v18  ;;  %v3081_v18 = vld [vmem:[#allocation8 + $0x30c] ss:$16 sps:$4 sm:$0xff]   ;;  %v3102_v33 = vld [vmem:[#allocation8 + $0x384] ss:$16 sps:$4 sm:$0xff]  }
 0x288   :  { %v1259_v37 = vmul.f32 %v3154_v35, %v2699_v19  ;;  %v1260_v41 = vpack.c.bf16 %v1256_v34, %v1256_v34  ;;  %v3079_v19 = vld [vmem:[#allocation8 + $0x308] ss:$16 sps:$4 sm:$0xff]   ;;  %v3156_v27 = vpop.eup %3155  ;;  %v3105_v34 = vld [vmem:[#allocation8 + $0x38c] ss:$16 sps:$4 sm:$0xff]   ;;  %v3100_v35 = vld [vmem:[#allocation8 + $0x380] ss:$16 sps:$4 sm:$0xff]  }
 0x289   :  { %v1261_v38 = vpack.c.bf16 %v1257_v36, %v1257_v36  ;;  %v1246_v30 = vadd.f32 1.0, %v3156_v27  ;;  %v3103_v36 = vld [vmem:[#allocation8 + $0x388] ss:$16 sps:$4 sm:$0xff]  }
 0x28a   :  { %v1263_v44 = vpack.c.bf16 %v1259_v37, %v1259_v37  ;;  %v3108_v37 = vld [vmem:[#allocation8 + $0x3a4] ss:$16 sps:$4 sm:$0xff]  }
 0x28b   :  { %2086 = vmatprep.mubr.bf16.mxu0 %v1261_v38  ;;  %2168 = vmatprep.mubr.bf16.mxu1 %v1261_v38  ;;  %3157 = vrcp.f32 %v1246_v30  ;;  %v3111_v38 = vld [vmem:[#allocation8 + $0x3ac] ss:$16 sps:$4 sm:$0xff]  }
 0x28c   :  { %2087 = vmatmul.mubr.bf16.vlgmr.msra.gmra.mrb[8].mxu0 %v1260_v41  ;;  %2169 = vmatmul.mubr.bf16.vlgmr.msra.gmra.mrb[8].mxu1 %v1260_v41  ;;  %v3114_v41 = vld [vmem:[#allocation8 + $0x3c4] ss:$16 sps:$4 sm:$0xff]  }
 0x28d   :  { %2096 = vmatpush1.bf16.msra.mxu0 %v3028_v39  ;;  %2178 = vmatpush1.bf16.msra.mxu1 %v3031_v40  ;;  %v3106_v39 = vld [vmem:[#allocation8 + $0x3a0] ss:$16 sps:$4 sm:$0xff]   ;;  %v3109_v40 = vld [vmem:[#allocation8 + $0x3a8] ss:$16 sps:$4 sm:$0xff]  }
 0x28e   :  { %2127 = vmatprep.mubr.bf16.mxu0 %v1263_v44  ;;  %2209 = vmatprep.mubr.bf16.mxu1 %v1263_v44  ;;  %v3115_v44 = vld [vmem:[#allocation8 + $0x3c8] ss:$16 sps:$4 sm:$0xff]  }
 0x28f   :  { %2097 = vmatprep.subr.bf16.mxu0 %v3036_v42  ;;  %2179 = vmatprep.subr.bf16.mxu1 %v3039_v43  ;;  %v3117_v42 = vld [vmem:[#allocation8 + $0x3cc] ss:$16 sps:$4 sm:$0xff]   ;;  %v3112_v43 = vld [vmem:[#allocation8 + $0x3c0] ss:$16 sps:$4 sm:$0xff]  }
 0x291   :  { %2098 = vmatpush1.bf16.msra.mxu0 %v3034_v45  ;;  %2180 = vmatpush1.bf16.msra.mxu1 %v3037_v46  ;;  %v3120_v45 = vld [vmem:[#allocation8 + $0x3e4] ss:$16 sps:$4 sm:$0xff]   ;;  %v3123_v46 = vld [vmem:[#allocation8 + $0x3ec] ss:$16 sps:$4 sm:$0xff]  }
 0x292   :  { %2099 = vmatprep.subr.bf16.mxu0 %v3042_v47  ;;  %2181 = vmatprep.subr.bf16.mxu1 %v3045_v48  ;;  %v3118_v48 = vld [vmem:[#allocation8 + $0x3e0] ss:$16 sps:$4 sm:$0xff]  }
 0x295   :  { %2100 = vmatpush1.bf16.msra.mxu0 %v3040_v49  ;;  %2182 = vmatpush1.bf16.msra.mxu1 %v3043_v50  ;;  %v3158_v47 = vpop.eup %3157  ;;  %v3121_v49 = vld [vmem:[#allocation8 + $0x3e8] ss:$16 sps:$4 sm:$0xff]  }
 0x296   :  { %2101 = vmatprep.subr.bf16.mxu0 %v3048_v51  ;;  %2183 = vmatprep.subr.bf16.mxu1 %v3051_v52  ;;  %v1258_v50 = vmul.f32 %v3158_v47, %v3541_v4  ;;  %v3124_v51 = vld [vmem:[%s3622_s7 + $0x4] ss:$8 sps:$4 sm:$0x7f]   ;;  %v3126_v52 = vld [vmem:[%s3622_s7] ss:$8 sps:$4 sm:$0x7f]  }
 0x297   :  { %s3352_s7 = smov [#allocation11]  }
 0x299   :  { %2102 = vmatpush1.bf16.msra.mxu0 %v3046_v53  ;;  %2184 = vmatpush1.bf16.msra.mxu1 %v3049_v54  ;;  %v1262_v53 = vpack.c.bf16 %v1258_v50, %v1258_v50  ;;  %v2333_v54 = vsel %vm151_vm0, %v3126_v52, 0 }
 0x29a   :  { %2103 = vmatprep.subr.bf16.mxu0 %v3054_v55  ;;  %2185 = vmatprep.subr.bf16.mxu1 %v3057_v56  ;;  %v3179_v55 = vld [vmem:[#allocation2] sm:$0xf]  ;;  %v1392_v56 = vld [vmem:[#allocation10] sm:$0xf] }
 0x29d   :  { %2104 = vmatpush1.bf16.msra.mxu0 %v3052_v57  ;;  %2186 = vmatpush1.bf16.msra.mxu1 %v3055_v58  ;;  %v2218_v57 = vld [vmem:[%s3624_s9] sm:$0x3]  ;;  %v1405_v58 = vrot.slane %v1392_v56, %v3516_v2  ;;  %s2395_s9 = sshll.u32 %s3352_s7, 4  ;;  %s2396_s9 = int_to_ptr.vmem [resolvable:$true] %s2395_s9 }
 0x29e   :  { %2105 = vmatprep.subr.bf16.mxu0 %v3060_v59  ;;  %2187 = vmatprep.subr.bf16.mxu1 %v3063_v60  ;;  %v1409_v59 = vrot.slane %v1392_v56, %v3505_v16  ;;  %v3561_v60 = vrot.slane %v2218_v57, %v3494_v13  ;;  %s3290_s25 = scalar_lea.vmem %s2396_s9, 256  ;;  %p3295_p13 = scmp.lt.s32.totalorder %s2396_s9, %s2396_s9 }
 0x29f   :  { %p3291_p12 = scmp.ne.s32.totalorder %s2396_s9, %s3290_s25  ;;  %p3296_p0 = scmp.lt.s32.totalorder %s3290_s25, %s3290_s25 }
 0x2a1   :  { %2106 = vmatpush1.bf16.msra.mxu0 %v3058_v62  ;;  %2188 = vmatpush1.bf16.msra.mxu1 %v3061_v63  ;;  %v3564_v62 = vrot.slane %v2218_v57, %v3502_v15  ;;  %p3297_p1 = por %p3296_p0, %p3295_p13 }
 0x2a2   :  { %2107 = vmatprep.subr.bf16.mxu0 %v3066_v1  ;;  %2189 = vmatprep.subr.bf16.mxu1 %v3069_v3 }
 0x2a3   :  { %p3298_p2 = pnand %p3297_p1, %p3291_p12 }
 0x2a5   :  { %2108 = vmatpush1.bf16.msra.mxu0 %v3064_v6  ;;  %2190 = vmatpush1.bf16.msra.mxu1 %v3067_v7 }
 0x2a6   :  { %2109 = vmatprep.subr.bf16.mxu0 %v3072_v8  ;;  %2191 = vmatprep.subr.bf16.mxu1 %v3075_v9 }
 0x2a9   :  { %2110 = vmatpush1.bf16.msra.mxu0 %v3070_v11  ;;  %2192 = vmatpush1.bf16.msra.mxu1 %v3073_v12  ;;  %v1397_v11 = vrot.slane %v1392_v56, %v3494_v13 }
 0x2aa   :  { %2111 = vmatprep.subr.bf16.mxu0 %v3078_v17  ;;  %2193 = vmatprep.subr.bf16.mxu1 %v3081_v18  ;;  %v1401_v17 = vrot.slane %v1392_v56, %v3502_v15 }
 0x2ad   :  { %2112 = vmatpush1.bf16.msra.mxu0 %v3076_v10  ;;  %2194 = vmatpush1.bf16.msra.mxu1 %v3079_v19 }
 0x2ae   :  { %2113 = vmatprep.subr.bf16.mxu0 %v3084_v20  ;;  %2195 = vmatprep.subr.bf16.mxu1 %v3087_v14 }
 0x2b1   :  { %2114 = vmatpush1.bf16.msra.mxu0 %v3082_v21  ;;  %2196 = vmatpush1.bf16.msra.mxu1 %v3085_v22 }
 0x2b2   :  { %2115 = vmatprep.subr.bf16.mxu0 %v3090_v23  ;;  %2197 = vmatprep.subr.bf16.mxu1 %v3093_v24 }
 0x2b5   :  { %2116 = vmatpush1.bf16.msra.mxu0 %v3088_v25  ;;  %2198 = vmatpush1.bf16.msra.mxu1 %v3091_v26 }
 0x2b6   :  { %2117 = vmatprep.subr.bf16.mxu0 %v3096_v28  ;;  %2199 = vmatprep.subr.bf16.mxu1 %v3099_v29 }
 0x2b9   :  { %2118 = vmatpush1.bf16.msra.mxu0 %v3094_v31  ;;  %2200 = vmatpush1.bf16.msra.mxu1 %v3097_v32 }
 0x2ba   :  { %2119 = vmatprep.subr.bf16.mxu0 %v3102_v33  ;;  %2201 = vmatprep.subr.bf16.mxu1 %v3105_v34 }
 0x2bd   :  { %2120 = vmatpush1.bf16.msra.mxu0 %v3100_v35  ;;  %2202 = vmatpush1.bf16.msra.mxu1 %v3103_v36 }
 0x2be   :  { %2121 = vmatprep.subr.bf16.mxu0 %v3108_v37  ;;  %2203 = vmatprep.subr.bf16.mxu1 %v3111_v38 }
 0x2c1   :  { %2122 = vmatpush1.bf16.msra.mxu0 %v3106_v39  ;;  %2204 = vmatpush1.bf16.msra.mxu1 %v3109_v40 }
 0x2c2   :  { %2123 = vmatprep.subr.bf16.mxu0 %v3114_v41  ;;  %2205 = vmatprep.subr.bf16.mxu1 %v3117_v42 }
 0x2c5   :  { %2124 = vmatpush1.bf16.msra.mxu0 %v3112_v43  ;;  %2206 = vmatpush1.bf16.msra.mxu1 %v3115_v44 }
 0x2c6   :  { %2125 = vmatprep.subr.bf16.mxu0 %v3120_v45  ;;  %2207 = vmatprep.subr.bf16.mxu1 %v3123_v46 }
 0x2c9   :  { %2126 = vmatpush1.bf16.msra.mxu0 %v3118_v48  ;;  %2208 = vmatpush1.bf16.msra.mxu1 %v3121_v49 }
 0x2ca   :  { %2694 = vmatprep.subr.msk.bf16.mxu0 %vm151_vm0, %v3124_v51 }
 0x2cc   :  { %2128 = vmatmul.mubr.bf16.vlgmr.msra.gmra.mrb[8].mxu0 %v1262_v53  ;;  %2210 = vmatmul.mubr.bf16.vlgmr.msra.gmra.mrb[8].mxu1 %v1262_v53 }
 0x2cd   :  { %2339 = vmatpush1.bf16.msra.mxu0 %v2333_v54  ;;  %2370 = vmatprep.mubr.bf16.mxu0 %v3351_v0 }
 0x2d8   :  { %2695 = vmatmul.mubr.msk.bf16.vlgmr.msra.gmra.mrb[8].mxu0 %vm147_vm1, %v3179_v55 }
 0x39f   :  { %v2211_v61 = vpop.f32.mrb[8].mxu1 }
 0x3a0   :  { %v2702_v0 = vadd.f32 %v2211_v61, %v1405_v58  ;;  %v2213_v63 = vpop.f32.mrb[9].mxu1 }
 0x3a1   :  { %v2703_v1 = vadd.f32 %v2213_v63, %v1409_v59  ;;  %v2215_v3 = vpop.f32.mrb[10].mxu1 }
 0x3a2   :  { %v3567_v4 = vsub.f32 %v3561_v60, %v2702_v0  ;;  %v2216_v6 = vpop.f32.mrb[11].mxu1 }
 0x3a3   :  { %v3570_v7 = vsub.f32 %v3564_v62, %v2703_v1 }
 0x3a4   :  { %v2239_v16 = vand.u32 2147483647, %v3567_v4 }
 0x3a5   :  { %v2240_v2 = vand.u32 2147483647, %v3570_v7 }
 0x3a6   :  { %v2241_v8 = vsub.f32 0.0, %v2239_v16 }
 0x3a7   :  { %v2242_v9 = vsub.f32 0.0, %v2240_v2 }
 0x3a8   :  { %v2243_v5 = vmul.f32 1.442695, %v2241_v8 }
 0x3a9   :  { %v2245_v12 = vmul.f32 1.442695, %v2242_v9 }
 0x3aa   :  { %3159 = vpow2.f32 %v2243_v5 }
 0x3ab   :  { %3161 = vpow2.f32 %v2245_v12  ;;  %v2372_v18 = vpop.f32.mrb[8].mxu0 }
 0x3ac   :  { %v2700_v10 = vadd.f32 %v2372_v18, %v1397_v11  ;;  %v2374_v19 = vpop.f32.mrb[9].mxu0 }
 0x3ad   :  { %v2701_v20 = vadd.f32 %v2374_v19, %v1401_v17  ;;  %v2376_v14 = vpop.f32.mrb[10].mxu0 }
 0x3ae   :  { %2381 = vst [vmem:[#allocation11] sm:$0xff] %v2700_v10  ;;  %v2377_v21 = vpop.f32.mrb[11].mxu0 }
 0x3af   :  { %2382 = vst [vmem:[#allocation11 + $0x8] sm:$0xff] %v2701_v20 }
 0x3b0   :  { %3301 = shalt.err (!%p3298_p2)
}
 0x3b1   :  { %s3302_s0 = scalar_lea.hbm %s3625_s10, 256 }
 0x3b2   :  { %p3303_p3 = scmp.ne.s32.totalorder %s3625_s10, %s3302_s0  ;;  %p3306_p4 = scmp.lt.u32.totalorder %s3302_s0, %s3625_s10 }
 0x3b4   :  { %p3308_p5 = pnand %p3306_p4, %p3303_p3 }
 0x3b6   :  { %3311 = shalt.err (!%p3308_p5)
}
 0x3b7   :  { %2398 = dma.vmem_to_hbm [thread:$0]  %s2396_s9, 256, %s3625_s10, [#allocation4]   ;;  %v3160_v22 = vpop.eup %3159  ;;  %v2219_v34 = vld [vmem:[%s3623_s8] sm:$0x3]  ;;  %v2233_v37 = vmax.f32 %v3567_v4, 0.0  ;;  %v2234_v41 = vmax.f32 %v3570_v7, 0.0  ;;  %vm2235_vm4 = vcmp.ne.f32.partialorder %v3567_v4, %v3567_v4  ;;  %vm2236_vm5 = vcmp.ne.f32.partialorder %v3570_v7, %v3570_v7 }
 0x3b8   :  { %v3162_v23 = vpop.eup %3161  ;;  %v2247_v24 = vadd.f32 1.0, %v3160_v22  ;;  %v2250_v26 = vmul.f32 -0.5, %v3160_v22  ;;  %v2253_v29 = vand.u32 2147483647, %v3160_v22  ;;  %v2275_v44 = vrot.slane %v2219_v34, %v3494_v13  ;;  %s3353_s8 = smov [#allocation12]  }
 0x3b9   :  { %v2256_v25 = vadd.f32 1.0, %v3162_v23  ;;  %v2259_v27 = vmul.f32 -0.5, %v3162_v23  ;;  %v2262_v31 = vand.u32 2147483647, %v3162_v23  ;;  %v2279_v47 = vrot.slane %v2219_v34, %v3502_v15  ;;  %s2405_s10 = sshll.u32 %s3353_s8, 4  ;;  %s2406_s10 = int_to_ptr.vmem [resolvable:$true] %s2405_s10 }
 0x3ba   :  { %3163 = vlog2.f32 %v2247_v24  ;;  %v2251_v28 = vadd.f32 1.0, %v2250_v26  ;;  %vm2254_vm2 = vcmp.lt.f32.partialorder %v2253_v29, 0.0004427343  ;;  %s3312_s19 = scalar_lea.vmem %s2406_s10, 256  ;;  %p3317_p7 = scmp.lt.s32.totalorder %s2406_s10, %s2406_s10 }
 0x3bb   :  { %3165 = vlog2.f32 %v2256_v25  ;;  %v2260_v30 = vadd.f32 1.0, %v2259_v27  ;;  %vm2263_vm3 = vcmp.lt.f32.partialorder %v2262_v31, 0.0004427343  ;;  %p3313_p6 = scmp.ne.s32.totalorder %s2406_s10, %s3312_s19  ;;  %p3318_p8 = scmp.lt.s32.totalorder %s3312_s19, %s3312_s19 }
 0x3bc   :  { %v2252_v36 = vmul.f32 %v3160_v22, %v2251_v28 }
 0x3bd   :  { %v2261_v39 = vmul.f32 %v3162_v23, %v2260_v30  ;;  %p3319_p9 = por %p3318_p8, %p3317_p7 }
 0x3bf   :  { %p3320_p10 = pnand %p3319_p9, %p3313_p6 }
 0x3c4   :  { %v3164_v32 = vpop.eup %3163 }
 0x3c5   :  { %v3166_v33 = vpop.eup %3165  ;;  %v2249_v35 = vmul.f32 0.6931472, %v3164_v32 }
 0x3c6   :  { %v2258_v38 = vmul.f32 0.6931472, %v3166_v33 }
 0x3c7   :  { %v2255_v40 = vsel %vm2254_vm2, %v2252_v36, %v2249_v35 }
 0x3c8   :  { %v2265_v42 = vadd.f32 %v2255_v40, %v2233_v37  ;;  %v2264_v43 = vsel %vm2263_vm3, %v2261_v39, %v2258_v38 }
 0x3c9   :  { %v2266_v45 = vadd.f32 %v2264_v43, %v2234_v41 }
 0x3ca   :  { %v2267_v46 = vsel %vm2235_vm4, %v3567_v4, %v2265_v42 }
 0x3cb   :  { %v2269_v48 = vsub.f32 %v3561_v60, %v2267_v46  ;;  %v2268_v49 = vsel %vm2236_vm5, %v3570_v7, %v2266_v45 }
 0x3cc   :  { %v2270_v50 = vsub.f32 %v3564_v62, %v2268_v49 }
 0x3cd   :  { %v2282_v51 = vsub.f32 %v2269_v48, %v2275_v44 }
 0x3ce   :  { %v2283_v52 = vsub.f32 %v2270_v50, %v2279_v47 }
 0x3cf   :  { %v2290_v53 = vand.u32 2147483647, %v2282_v51  ;;  %v2284_v2 = vmax.f32 %v2282_v51, 0.0  ;;  %vm2286_vm8 = vcmp.ne.f32.partialorder %v2282_v51, %v2282_v51 }
 0x3d0   :  { %v2291_v54 = vand.u32 2147483647, %v2283_v52  ;;  %v2285_v11 = vmax.f32 %v2283_v52, 0.0  ;;  %vm2287_vm9 = vcmp.ne.f32.partialorder %v2283_v52, %v2283_v52 }
 0x3d1   :  { %v2292_v55 = vsub.f32 0.0, %v2290_v53 }
 0x3d2   :  { %v2293_v13 = vsub.f32 0.0, %v2291_v54 }
 0x3d3   :  { %v2294_v56 = vmul.f32 1.442695, %v2292_v55 }
 0x3d4   :  { %v2296_v57 = vmul.f32 1.442695, %v2293_v13 }
 0x3d5   :  { %3167 = vpow2.f32 %v2294_v56 }
 0x3d6   :  { %3169 = vpow2.f32 %v2296_v57 }
 0x3df   :  { %v3168_v58 = vpop.eup %3167 }
 0x3e0   :  { %v3170_v59 = vpop.eup %3169  ;;  %v2298_v61 = vadd.f32 1.0, %v3168_v58  ;;  %v2301_v60 = vmul.f32 -0.5, %v3168_v58  ;;  %v2304_v62 = vand.u32 2147483647, %v3168_v58 }
 0x3e1   :  { %v2307_v15 = vadd.f32 1.0, %v3170_v59  ;;  %v2310_v0 = vmul.f32 -0.5, %v3170_v59  ;;  %v2313_v3 = vand.u32 2147483647, %v3170_v59 }
 0x3e2   :  { %3171 = vlog2.f32 %v2298_v61  ;;  %v2302_v63 = vadd.f32 1.0, %v2301_v60  ;;  %vm2305_vm6 = vcmp.lt.f32.partialorder %v2304_v62, 0.0004427343 }
 0x3e3   :  { %3173 = vlog2.f32 %v2307_v15  ;;  %v2311_v1 = vadd.f32 1.0, %v2310_v0  ;;  %vm2314_vm7 = vcmp.lt.f32.partialorder %v2313_v3, 0.0004427343 }
 0x3e4   :  { %v2303_v16 = vmul.f32 %v3168_v58, %v2302_v63 }
 0x3e5   :  { %v2312_v9 = vmul.f32 %v3170_v59, %v2311_v1 }
 0x3ec   :  { %v3172_v4 = vpop.eup %3171 }
 0x3ed   :  { %v3174_v6 = vpop.eup %3173  ;;  %v2300_v7 = vmul.f32 0.6931472, %v3172_v4 }
 0x3ee   :  { %v2309_v8 = vmul.f32 0.6931472, %v3174_v6 }
 0x3ef   :  { %v2306_v5 = vsel %vm2305_vm6, %v2303_v16, %v2300_v7 }
 0x3f0   :  { %v2316_v12 = vadd.f32 %v2306_v5, %v2284_v2  ;;  %v2315_v17 = vsel %vm2314_vm7, %v2312_v9, %v2309_v8 }
 0x3f1   :  { %v2317_v18 = vadd.f32 %v2315_v17, %v2285_v11 }
 0x3f2   :  { %v2318_v10 = vsel %vm2286_vm8, %v2282_v51, %v2316_v12 }
 0x3f3   :  { %v2320_v19 = vadd.f32 %v2318_v10, %v2275_v44  ;;  %v2319_v20 = vsel %vm2287_vm9, %v2283_v52, %v2317_v18 }
 0x3f4   :  { %v2321_v14 = vadd.f32 %v2319_v20, %v2279_v47 }
 0x3f5   :  { %v2383_v21 = vmul.f32 1.442695, %v2320_v19 }
 0x3f6   :  { %v2385_v22 = vmul.f32 1.442695, %v2321_v14 }
 0x3f7   :  { %3175 = vpow2.f32 %v2383_v21 }
 0x3f8   :  { %3177 = vpow2.f32 %v2385_v22 }
 0x401   :  { %v3176_v23 = vpop.eup %3175 }
 0x402   :  { %v3178_v24 = vpop.eup %3177  ;;  %2387 = vst [vmem:[#allocation12] sm:$0xff] %v3176_v23 }
 0x403   :  { %2388 = vst [vmem:[#allocation12 + $0x8] sm:$0xff] %v3178_v24 }
 0x404   :  { %3323 = shalt.err (!%p3320_p10)
}
 0x405   :  { %s3324_s27 = scalar_lea.hbm %s3626_s11, 256 }
 0x406   :  { %p3325_p11 = scmp.ne.s32.totalorder %s3626_s11, %s3324_s27  ;;  %p3328_p12 = scmp.lt.u32.totalorder %s3324_s27, %s3626_s11 }
 0x408   :  { %p3330_p13 = pnand %p3328_p12, %p3325_p11 }
 0x40a   :  { %3333 = shalt.err (!%p3330_p13)
}
 0x40b   :  { %2408 = dma.vmem_to_hbm [thread:$0]  %s2406_s10, 256, %s3626_s11, [#allocation13]  }
 0x40c   :  { %3340 = dma.done.wait [#allocation4], 256  }
 0x40d   :  { %3341 = vsyncadd [#allocation4], 4294967040 }
 0x40e   :  { %3342 = dma.done.wait [#allocation13], 256  }
 0x40f   :  { %3343 = vsyncadd [#allocation13], 4294967040 }
 0x410   :  { %2415 = vsyncpa [#allocation3], 1 }
 0x411   :  { %2416 = vsyncpa [#allocation6], 1 }
 0x412   :  { %2417 = vsyncpa [#allocation9], 1 }
 0x413   :  { %2418 = vsyncpa [#allocation4], 1 }
 0x414   :  { %2419 = vsyncpa [#allocation13], 1 }

</bundles_post_ra>
